<compile_context>
chip_gen: v6e
topology: v6e:2x2x1
jax: 0.10.0
libtpu: 0.0.40
codegen_flags: <defaults>
</compile_context>

<pallas_src>
import functools

import jax
import jax.numpy as jnp
from jax.experimental import pallas as pl
from jax.experimental.pallas import tpu as pltpu


_MASK_VALUE = -1e30  # padded key positions -> exp() underflows to exactly 0


def _additive_attention_kernel(qp_ref, kpt_ref, v_ref, wv_ref, out_ref,
                               m_sc, l_sc, acc_sc, *, k_valid, k_tile, bt):
    """One (batch-block, key-tile) grid step of additive attention.

    qp_ref : (bt, Q, H)    f32  query projections (resident across K tiles)
    kpt_ref: (bt, H, Kt)   f32  key projections, K on the lane axis
    v_ref  : (bt, Kt, Vd)  f32  values, pre-transposed to (K, Vd)
    wv_ref : (H, 1)        f32  scoring vector w_v (column layout)
    out_ref: (bt, Q, Vd)        context output (written on the last K tile)
    m_sc / l_sc / acc_sc        online-softmax running max / sum / accumulator
    """
    k_idx = pl.program_id(1)

    @pl.when(k_idx == 0)
    def _init():
        m_sc[...] = jnp.full_like(m_sc, -jnp.inf)
        l_sc[...] = jnp.zeros_like(l_sc)
        acc_sc[...] = jnp.zeros_like(acc_sc)

    wv = wv_ref[...]                                    # (H, 1)
    k_base = k_idx * k_tile

    # Small static unroll over the fused batch block; every op is <= 3-D and
    # keeps K on the lane axis.
    for b in range(bt):
        qp = qp_ref[b]                                  # (Q, H)
        kpt = kpt_ref[b]                                # (H, Kt)

        # Additive features live only as a (Q, H, Kt) tile (never (Q, K, H)).
        feats = jnp.tanh(qp[:, :, None] + kpt[None, :, :])        # (Q, H, Kt)
        # w_v weighting + reduce over H (sublane axis) -> (Q, Kt), K on lanes.
        scores = jnp.sum(feats * wv[None, :, :], axis=1)          # (Q, Kt)

        # Mask the padded key tail.
        lane = jax.lax.broadcasted_iota(jnp.int32, scores.shape, 1)
        scores = jnp.where(k_base + lane < k_valid, scores, _MASK_VALUE)

        # Online softmax update.
        m_prev = m_sc[b]                                           # (Q, 1)
        m_new = jnp.maximum(m_prev, jnp.max(scores, axis=-1, keepdims=True))
        alpha = jnp.exp(m_prev - m_new)
        p = jnp.exp(scores - m_new)                                # (Q, Kt)
        l_sc[b] = alpha * l_sc[b] + jnp.sum(p, axis=-1, keepdims=True)
        acc_sc[b] = alpha * acc_sc[b] + jnp.dot(
            p, v_ref[b], preferred_element_type=jnp.float32)       # (Q, Vd)
        m_sc[b] = m_new

    @pl.when(k_idx == pl.num_programs(1) - 1)
    def _finalize():
        l = l_sc[...]
        inv_l = pl.reciprocal(l, approx=True)           # EUP slot
        inv_l = inv_l * (2.0 - l * inv_l)               # one Newton step
        out_ref[...] = (acc_sc[...] * inv_l).astype(out_ref.dtype)


def _pick_batch_block(B, Q, H, k_tile, budget_bytes=4 << 20, max_bt=8):
    """Largest divisor of B (capped) whose (Q, H, Kt) feats tile fits the budget."""
    bt = 1
    for cand in range(2, min(B, max_bt) + 1):
        if B % cand == 0 and cand * Q * H * k_tile * 4 <= budget_bytes:
            bt = cand
    return bt


def additive_attention(queries, keys, values, W_q, W_k, w_v, *,
                       k_tile=128, bt=None):
    """queries (B,Q,Dq), keys (B,K,Dk), values (B,Vd,K).
    W_q (H,Dq), W_k (H,Dk), w_v (1,H)  (PyTorch nn.Linear weight layout).
    Returns bmm(softmax(additive_scores), values.transpose(1, 2)): (B, Q, Vd)."""
    B, Q, Dq = queries.shape
    _, K, Dk = keys.shape
    _, Vd, Kv = values.shape
    assert Kv == K
    H = W_q.shape[0]

    # --- Hoisted projections: two big MXU-friendly matmuls in XLA -----------
    q_proj = jnp.einsum('bqd,hd->bqh', queries, W_q,
                        preferred_element_type=jnp.float32)        # (B, Q, H)
    # K kept on the lane axis end-to-end: (B, H, K).
    k_projT = jnp.einsum('bkd,hd->bhk', keys, W_k,
                         preferred_element_type=jnp.float32)       # (B, H, K)
    # Pre-transpose values so the kernel contracts (Q,K) x (K,Vd) directly.
    v_t = jnp.swapaxes(values, 1, 2).astype(jnp.float32)           # (B, K, Vd)
    wv_col = w_v.T.astype(jnp.float32)                             # (H, 1)

    # --- Pad the key axis to a multiple of the K tile (masked in-kernel) ----
    num_k = -(-K // k_tile)
    k_pad = num_k * k_tile
    if k_pad != K:
        k_projT = jnp.pad(k_projT, ((0, 0), (0, 0), (0, k_pad - K)))
        v_t = jnp.pad(v_t, ((0, 0), (0, k_pad - K), (0, 0)))

    if bt is None:
        bt = _pick_batch_block(B, Q, H, k_tile)
    assert B % bt == 0

    kernel = functools.partial(_additive_attention_kernel,
                               k_valid=K, k_tile=k_tile, bt=bt)

    grid_spec = pltpu.PrefetchScalarGridSpec(
        num_scalar_prefetch=0,
        grid=(B // bt, num_k),                    # reduction (K) axis last
        in_specs=[
            pl.BlockSpec((bt, Q, H), lambda b, k: (b, 0, 0)),
            pl.BlockSpec((bt, H, k_tile), lambda b, k: (b, 0, k)),
            pl.BlockSpec((bt, k_tile, Vd), lambda b, k: (b, k, 0)),
            pl.BlockSpec((H, 1), lambda b, k: (0, 0)),
        ],
        out_specs=pl.BlockSpec((bt, Q, Vd), lambda b, k: (b, 0, 0)),
        scratch_shapes=[
            pltpu.VMEM((bt, Q, 1), jnp.float32),      # running max  m
            pltpu.VMEM((bt, Q, 1), jnp.float32),      # running sum  l
            pltpu.VMEM((bt, Q, Vd), jnp.float32),     # running attn @ V acc
        ],
    )

    return pl.pallas_call(
        kernel,
        out_shape=jax.ShapeDtypeStruct((B, Q, Vd), queries.dtype),
        grid_spec=grid_spec,
        compiler_params=pltpu.CompilerParams(
            dimension_semantics=("parallel", "arbitrary"),
            vmem_limit_bytes=32 * 1024 * 1024),
    )(q_proj, k_projT, v_t, wv_col)


def _reference(queries, keys, values, W_q, W_k, w_v):
    q_proj = jnp.einsum('bqd,hd->bqh', queries, W_q)
    k_proj = jnp.einsum('bkd,hd->bkh', keys, W_k)
    feats = jnp.tanh(q_proj[:, :, None, :] + k_proj[:, None, :, :])
    scores = jnp.einsum('bqkh,h->bqk', feats, w_v[0])
    attn = jax.nn.softmax(scores, axis=-1)
    return jnp.einsum('bqk,bvk->bqv', attn, values)


if __name__ == "__main__":
    # K > 128 so the K tiling / online softmax / tail masking path is exercised.
    B, Q, K = 2, 8, 150
    query_size, key_size, num_hiddens, V_dim = 20, 16, 32, 6

    root = jax.random.PRNGKey(0)
    kq, kk, kv, kwq, kwk, kwv = jax.random.split(root, 6)

    queries = jax.random.normal(kq, (B, Q, query_size), dtype=jnp.float32)
    keys = jax.random.normal(kk, (B, K, key_size), dtype=jnp.float32)
    values = jax.random.normal(kv, (B, V_dim, K), dtype=jnp.float32)

    # nn.Linear weight shapes: (out_features, in_features).
    W_q = jax.random.normal(kwq, (num_hiddens, query_size), dtype=jnp.float32) * 0.1
    W_k = jax.random.normal(kwk, (num_hiddens, key_size), dtype=jnp.float32) * 0.1
    w_v = jax.random.normal(kwv, (1, num_hiddens), dtype=jnp.float32) * 0.1

    out = additive_attention(queries, keys, values, W_q, W_k, w_v)
    out = jax.block_until_ready(out)

    ref = _reference(queries, keys, values, W_q, W_k, w_v)
    assert out.shape == (B, Q, V_dim)
    err = float(jnp.max(jnp.abs(out - ref)))
    assert jnp.allclose(out, ref, atol=1e-4, rtol=1e-4), err

    print("KERNEL_OK")
</pallas_src>

<mosaic_0001>
module attributes {stable_mosaic.version = 11 : i64} {
  func.func @_additive_attention_kernel(%arg0: i32, %arg1: i32, %arg2: memref<2x8x32xf32, #tpu.memory_space<vmem>>, %arg3: memref<2x32x128xf32, #tpu.memory_space<vmem>>, %arg4: memref<2x128x6xf32, #tpu.memory_space<vmem>>, %arg5: memref<32x1xf32, #tpu.memory_space<vmem>>, %arg6: memref<2x8x6xf32, #tpu.memory_space<vmem>>, %arg7: memref<2x8x1xf32, #tpu.memory_space<vmem>>, %arg8: memref<2x8x1xf32, #tpu.memory_space<vmem>>, %arg9: memref<2x8x6xf32, #tpu.memory_space<vmem>>) attributes {dimension_semantics = [#tpu.dimension_semantics<parallel>, #tpu.dimension_semantics<arbitrary>], iteration_bounds = array<i64: 1, 2>, scalar_prefetch = 0 : i64, scratch_operands = 3 : i64, tpu.core_type = #tpu.core_type<tc>, window_params = [{transform_indices = @transform_0, window_bounds = array<i64: 2, 8, 32>}, {transform_indices = @transform_1, window_bounds = array<i64: 2, 32, 128>}, {transform_indices = @transform_2, window_bounds = array<i64: 2, 128, 6>}, {pipeline_mode = #tpu.pipeline_mode<synchronous>, transform_indices = @transform_3, window_bounds = array<i64: 32, 1>}, {transform_indices = @transform_4, window_bounds = array<i64: 2, 8, 6>}]} {
    %c0_i32 = arith.constant 0 : i32
    %0 = arith.cmpi eq, %arg1, %c0_i32 : i32
    %1 = arith.extui %0 : i1 to i32
    %c0_i32_0 = arith.constant 0 : i32
    %2 = arith.cmpi ne, %1, %c0_i32_0 : i32
    scf.if %2 {
      %cst_66 = arith.constant 0xFF800000 : f32
      %116 = vector.broadcast %cst_66 : f32 to vector<2x8x1xf32>
      %c0_67 = arith.constant 0 : index
      %c0_68 = arith.constant 0 : index
      %c0_69 = arith.constant 0 : index
      %117 = vector.load %arg7[%c0_67, %c0_68, %c0_69] : memref<2x8x1xf32, #tpu.memory_space<vmem>>, vector<2x8x1xf32>
      tpu.vector_store %arg7[%c0_67, %c0_68, %c0_69], %116 {strides = array<i32>} : memref<2x8x1xf32, #tpu.memory_space<vmem>>, vector<2x8x1xf32>,
      %cst_70 = arith.constant 0.000000e+00 : f32
      %118 = vector.broadcast %cst_70 : f32 to vector<2x8x1xf32>
      %c0_71 = arith.constant 0 : index
      %c0_72 = arith.constant 0 : index
      %c0_73 = arith.constant 0 : index
      %119 = vector.load %arg8[%c0_71, %c0_72, %c0_73] : memref<2x8x1xf32, #tpu.memory_space<vmem>>, vector<2x8x1xf32>
      tpu.vector_store %arg8[%c0_71, %c0_72, %c0_73], %118 {strides = array<i32>} : memref<2x8x1xf32, #tpu.memory_space<vmem>>, vector<2x8x1xf32>,
      %cst_74 = arith.constant 0.000000e+00 : f32
      %120 = vector.broadcast %cst_74 : f32 to vector<2x8x6xf32>
      %c0_75 = arith.constant 0 : index
      %c0_76 = arith.constant 0 : index
      %c0_77 = arith.constant 0 : index
      %121 = vector.load %arg9[%c0_75, %c0_76, %c0_77] : memref<2x8x6xf32, #tpu.memory_space<vmem>>, vector<2x8x6xf32>
      tpu.vector_store %arg9[%c0_75, %c0_76, %c0_77], %120 {strides = array<i32>} : memref<2x8x6xf32, #tpu.memory_space<vmem>>, vector<2x8x6xf32>,
    } else {
    }
    %c0 = arith.constant 0 : index
    %c0_1 = arith.constant 0 : index
    %3 = vector.load %arg5[%c0, %c0_1] : memref<32x1xf32, #tpu.memory_space<vmem>>, vector<32x1xf32>
    %c128_i32 = arith.constant 128 : i32
    %4 = arith.muli %arg1, %c128_i32 : i32
    %c0_2 = arith.constant 0 : index
    %c0_3 = arith.constant 0 : index
    %c0_4 = arith.constant 0 : index
    %5 = vector.load %arg2[%c0_2, %c0_3, %c0_4] : memref<2x8x32xf32, #tpu.memory_space<vmem>>, vector<1x8x32xf32>
    %6 = vector.shape_cast %5 : vector<1x8x32xf32> to vector<8x32xf32>
    %c0_5 = arith.constant 0 : index
    %c0_6 = arith.constant 0 : index
    %c0_7 = arith.constant 0 : index
    %7 = vector.load %arg3[%c0_5, %c0_6, %c0_7] : memref<2x32x128xf32, #tpu.memory_space<vmem>>, vector<1x32x128xf32>
    %8 = vector.shape_cast %7 : vector<1x32x128xf32> to vector<32x128xf32>
    %9 = vector.shape_cast %6 : vector<8x32xf32> to vector<8x32x1xf32>
    %10 = vector.shape_cast %8 : vector<32x128xf32> to vector<1x32x128xf32>
    %11 = vector.broadcast %9 : vector<8x32x1xf32> to vector<8x32x128xf32>
    %12 = vector.broadcast %10 : vector<1x32x128xf32> to vector<8x32x128xf32>
    %13 = arith.addf %11, %12 : vector<8x32x128xf32>
    %14 = math.tanh %13 : vector<8x32x128xf32>
    %15 = vector.shape_cast %3 : vector<32x1xf32> to vector<1x32x1xf32>
    %16 = vector.broadcast %15 : vector<1x32x1xf32> to vector<8x32x128xf32>
    %17 = arith.mulf %14, %16 : vector<8x32x128xf32>
    %cst = arith.constant dense<0.000000e+00> : vector<8x128xf32>
    %18 = vector.multi_reduction <add>, %17, %cst [1] : vector<8x32x128xf32> to vector<8x128xf32>
    %19 = tpu.iota {dimensions = array<i32: 1>} : vector<8x128xi32>
    %20 = vector.broadcast %4 : i32 to vector<8x128xi32>
    %21 = arith.addi %20, %19 : vector<8x128xi32>
    %c150_i32 = arith.constant 150 : i32
    %22 = vector.broadcast %c150_i32 : i32 to vector<8x128xi32>
    %23 = arith.cmpi slt, %21, %22 : vector<8x128xi32>
    %cst_8 = arith.constant -1.000000e+30 : f32
    %24 = vector.broadcast %cst_8 : f32 to vector<8x128xf32>
    %25 = arith.select %23, %18, %24 : vector<8x128xi1>, vector<8x128xf32>
    %c0_9 = arith.constant 0 : index
    %c0_10 = arith.constant 0 : index
    %c0_11 = arith.constant 0 : index
    %26 = vector.load %arg7[%c0_9, %c0_10, %c0_11] : memref<2x8x1xf32, #tpu.memory_space<vmem>>, vector<1x8x1xf32>
    %27 = vector.shape_cast %26 : vector<1x8x1xf32> to vector<8x1xf32>
    %cst_12 = arith.constant dense<0xFF800000> : vector<8xf32>
    %28 = vector.multi_reduction <maximumf>, %25, %cst_12 [1] : vector<8x128xf32> to vector<8xf32>
    %29 = vector.shape_cast %28 : vector<8xf32> to vector<8x1xf32>
    %30 = arith.maximumf %27, %29 : vector<8x1xf32>
    %31 = arith.subf %27, %30 : vector<8x1xf32>
    %32 = math.exp %31 : vector<8x1xf32>
    %33 = vector.broadcast %30 : vector<8x1xf32> to vector<8x128xf32>
    %34 = arith.subf %25, %33 : vector<8x128xf32>
    %35 = math.exp %34 : vector<8x128xf32>
    %c0_13 = arith.constant 0 : index
    %c0_14 = arith.constant 0 : index
    %c0_15 = arith.constant 0 : index
    %36 = vector.load %arg8[%c0_13, %c0_14, %c0_15] : memref<2x8x1xf32, #tpu.memory_space<vmem>>, vector<1x8x1xf32>
    %37 = vector.shape_cast %36 : vector<1x8x1xf32> to vector<8x1xf32>
    %38 = arith.mulf %32, %37 : vector<8x1xf32>
    %cst_16 = arith.constant dense<0.000000e+00> : vector<8xf32>
    %39 = vector.multi_reduction <add>, %35, %cst_16 [1] : vector<8x128xf32> to vector<8xf32>
    %40 = vector.shape_cast %39 : vector<8xf32> to vector<8x1xf32>
    %41 = arith.addf %38, %40 : vector<8x1xf32>
    %c0_17 = arith.constant 0 : index
    %c0_18 = arith.constant 0 : index
    %c0_19 = arith.constant 0 : index
    %42 = vector.load %arg8[%c0_17, %c0_18, %c0_19] : memref<2x8x1xf32, #tpu.memory_space<vmem>>, vector<1x8x1xf32>
    %43 = vector.shape_cast %42 : vector<1x8x1xf32> to vector<8x1xf32>
    %44 = vector.shape_cast %41 : vector<8x1xf32> to vector<1x8x1xf32>
    tpu.vector_store %arg8[%c0_17, %c0_18, %c0_19], %44 {strides = array<i32>} : memref<2x8x1xf32, #tpu.memory_space<vmem>>, vector<1x8x1xf32>,
    %c0_20 = arith.constant 0 : index
    %c0_21 = arith.constant 0 : index
    %c0_22 = arith.constant 0 : index
    %45 = vector.load %arg9[%c0_20, %c0_21, %c0_22] : memref<2x8x6xf32, #tpu.memory_space<vmem>>, vector<1x8x6xf32>
    %46 = vector.shape_cast %45 : vector<1x8x6xf32> to vector<8x6xf32>
    %47 = vector.broadcast %32 : vector<8x1xf32> to vector<8x6xf32>
    %48 = arith.mulf %47, %46 : vector<8x6xf32>
    %c0_23 = arith.constant 0 : index
    %c0_24 = arith.constant 0 : index
    %c0_25 = arith.constant 0 : index
    %49 = vector.load %arg4[%c0_23, %c0_24, %c0_25] : memref<2x128x6xf32, #tpu.memory_space<vmem>>, vector<1x128x6xf32>
    %50 = vector.shape_cast %49 : vector<1x128x6xf32> to vector<128x6xf32>
    %cst_26 = arith.constant dense<0.000000e+00> : vector<8x6xf32>
    %51 = tpu.matmul %35, %50, %cst_26 {dimension_numbers = #tpu.dot_dimension_numbers<[1], [0], [0], [1], [0, 0, 1, 1], [], []>} : vector<8x128xf32>, vector<128x6xf32>, vector<8x6xf32> -> vector<8x6xf32>
    %52 = arith.addf %48, %51 : vector<8x6xf32>
    %c0_27 = arith.constant 0 : index
    %c0_28 = arith.constant 0 : index
    %c0_29 = arith.constant 0 : index
    %53 = vector.load %arg9[%c0_27, %c0_28, %c0_29] : memref<2x8x6xf32, #tpu.memory_space<vmem>>, vector<1x8x6xf32>
    %54 = vector.shape_cast %53 : vector<1x8x6xf32> to vector<8x6xf32>
    %55 = vector.shape_cast %52 : vector<8x6xf32> to vector<1x8x6xf32>
    tpu.vector_store %arg9[%c0_27, %c0_28, %c0_29], %55 {strides = array<i32>} : memref<2x8x6xf32, #tpu.memory_space<vmem>>, vector<1x8x6xf32>,
    %c0_30 = arith.constant 0 : index
    %c0_31 = arith.constant 0 : index
    %c0_32 = arith.constant 0 : index
    %56 = vector.load %arg7[%c0_30, %c0_31, %c0_32] : memref<2x8x1xf32, #tpu.memory_space<vmem>>, vector<1x8x1xf32>
    %57 = vector.shape_cast %56 : vector<1x8x1xf32> to vector<8x1xf32>
    %58 = vector.shape_cast %30 : vector<8x1xf32> to vector<1x8x1xf32>
    tpu.vector_store %arg7[%c0_30, %c0_31, %c0_32], %58 {strides = array<i32>} : memref<2x8x1xf32, #tpu.memory_space<vmem>>, vector<1x8x1xf32>,
    %c1 = arith.constant 1 : index
    %c0_33 = arith.constant 0 : index
    %c0_34 = arith.constant 0 : index
    %59 = vector.load %arg2[%c1, %c0_33, %c0_34] : memref<2x8x32xf32, #tpu.memory_space<vmem>>, vector<1x8x32xf32>
    %60 = vector.shape_cast %59 : vector<1x8x32xf32> to vector<8x32xf32>
    %c1_35 = arith.constant 1 : index
    %c0_36 = arith.constant 0 : index
    %c0_37 = arith.constant 0 : index
    %61 = vector.load %arg3[%c1_35, %c0_36, %c0_37] : memref<2x32x128xf32, #tpu.memory_space<vmem>>, vector<1x32x128xf32>
    %62 = vector.shape_cast %61 : vector<1x32x128xf32> to vector<32x128xf32>
    %63 = vector.shape_cast %60 : vector<8x32xf32> to vector<8x32x1xf32>
    %64 = vector.shape_cast %62 : vector<32x128xf32> to vector<1x32x128xf32>
    %65 = vector.broadcast %63 : vector<8x32x1xf32> to vector<8x32x128xf32>
    %66 = vector.broadcast %64 : vector<1x32x128xf32> to vector<8x32x128xf32>
    %67 = arith.addf %65, %66 : vector<8x32x128xf32>
    %68 = math.tanh %67 : vector<8x32x128xf32>
    %69 = vector.shape_cast %3 : vector<32x1xf32> to vector<1x32x1xf32>
    %70 = vector.broadcast %69 : vector<1x32x1xf32> to vector<8x32x128xf32>
    %71 = arith.mulf %68, %70 : vector<8x32x128xf32>
    %cst_38 = arith.constant dense<0.000000e+00> : vector<8x128xf32>
    %72 = vector.multi_reduction <add>, %71, %cst_38 [1] : vector<8x32x128xf32> to vector<8x128xf32>
    %73 = tpu.iota {dimensions = array<i32: 1>} : vector<8x128xi32>
    %74 = vector.broadcast %4 : i32 to vector<8x128xi32>
    %75 = arith.addi %74, %73 : vector<8x128xi32>
    %c150_i32_39 = arith.constant 150 : i32
    %76 = vector.broadcast %c150_i32_39 : i32 to vector<8x128xi32>
    %77 = arith.cmpi slt, %75, %76 : vector<8x128xi32>
    %cst_40 = arith.constant -1.000000e+30 : f32
    %78 = vector.broadcast %cst_40 : f32 to vector<8x128xf32>
    %79 = arith.select %77, %72, %78 : vector<8x128xi1>, vector<8x128xf32>
    %c1_41 = arith.constant 1 : index
    %c0_42 = arith.constant 0 : index
    %c0_43 = arith.constant 0 : index
    %80 = vector.load %arg7[%c1_41, %c0_42, %c0_43] : memref<2x8x1xf32, #tpu.memory_space<vmem>>, vector<1x8x1xf32>
    %81 = vector.shape_cast %80 : vector<1x8x1xf32> to vector<8x1xf32>
    %cst_44 = arith.constant dense<0xFF800000> : vector<8xf32>
    %82 = vector.multi_reduction <maximumf>, %79, %cst_44 [1] : vector<8x128xf32> to vector<8xf32>
    %83 = vector.shape_cast %82 : vector<8xf32> to vector<8x1xf32>
    %84 = arith.maximumf %81, %83 : vector<8x1xf32>
    %85 = arith.subf %81, %84 : vector<8x1xf32>
    %86 = math.exp %85 : vector<8x1xf32>
    %87 = vector.broadcast %84 : vector<8x1xf32> to vector<8x128xf32>
    %88 = arith.subf %79, %87 : vector<8x128xf32>
    %89 = math.exp %88 : vector<8x128xf32>
    %c1_45 = arith.constant 1 : index
    %c0_46 = arith.constant 0 : index
    %c0_47 = arith.constant 0 : index
    %90 = vector.load %arg8[%c1_45, %c0_46, %c0_47] : memref<2x8x1xf32, #tpu.memory_space<vmem>>, vector<1x8x1xf32>
    %91 = vector.shape_cast %90 : vector<1x8x1xf32> to vector<8x1xf32>
    %92 = arith.mulf %86, %91 : vector<8x1xf32>
    %cst_48 = arith.constant dense<0.000000e+00> : vector<8xf32>
    %93 = vector.multi_reduction <add>, %89, %cst_48 [1] : vector<8x128xf32> to vector<8xf32>
    %94 = vector.shape_cast %93 : vector<8xf32> to vector<8x1xf32>
    %95 = arith.addf %92, %94 : vector<8x1xf32>
    %c1_49 = arith.constant 1 : index
    %c0_50 = arith.constant 0 : index
    %c0_51 = arith.constant 0 : index
    %96 = vector.load %arg8[%c1_49, %c0_50, %c0_51] : memref<2x8x1xf32, #tpu.memory_space<vmem>>, vector<1x8x1xf32>
    %97 = vector.shape_cast %96 : vector<1x8x1xf32> to vector<8x1xf32>
    %98 = vector.shape_cast %95 : vector<8x1xf32> to vector<1x8x1xf32>
    tpu.vector_store %arg8[%c1_49, %c0_50, %c0_51], %98 {strides = array<i32>} : memref<2x8x1xf32, #tpu.memory_space<vmem>>, vector<1x8x1xf32>,
    %c1_52 = arith.constant 1 : index
    %c0_53 = arith.constant 0 : index
    %c0_54 = arith.constant 0 : index
    %99 = vector.load %arg9[%c1_52, %c0_53, %c0_54] : memref<2x8x6xf32, #tpu.memory_space<vmem>>, vector<1x8x6xf32>
    %100 = vector.shape_cast %99 : vector<1x8x6xf32> to vector<8x6xf32>
    %101 = vector.broadcast %86 : vector<8x1xf32> to vector<8x6xf32>
    %102 = arith.mulf %101, %100 : vector<8x6xf32>
    %c1_55 = arith.constant 1 : index
    %c0_56 = arith.constant 0 : index
    %c0_57 = arith.constant 0 : index
    %103 = vector.load %arg4[%c1_55, %c0_56, %c0_57] : memref<2x128x6xf32, #tpu.memory_space<vmem>>, vector<1x128x6xf32>
    %104 = vector.shape_cast %103 : vector<1x128x6xf32> to vector<128x6xf32>
    %cst_58 = arith.constant dense<0.000000e+00> : vector<8x6xf32>
    %105 = tpu.matmul %89, %104, %cst_58 {dimension_numbers = #tpu.dot_dimension_numbers<[1], [0], [0], [1], [0, 0, 1, 1], [], []>} : vector<8x128xf32>, vector<128x6xf32>, vector<8x6xf32> -> vector<8x6xf32>
    %106 = arith.addf %102, %105 : vector<8x6xf32>
    %c1_59 = arith.constant 1 : index
    %c0_60 = arith.constant 0 : index
    %c0_61 = arith.constant 0 : index
    %107 = vector.load %arg9[%c1_59, %c0_60, %c0_61] : memref<2x8x6xf32, #tpu.memory_space<vmem>>, vector<1x8x6xf32>
    %108 = vector.shape_cast %107 : vector<1x8x6xf32> to vector<8x6xf32>
    %109 = vector.shape_cast %106 : vector<8x6xf32> to vector<1x8x6xf32>
    tpu.vector_store %arg9[%c1_59, %c0_60, %c0_61], %109 {strides = array<i32>} : memref<2x8x6xf32, #tpu.memory_space<vmem>>, vector<1x8x6xf32>,
    %c1_62 = arith.constant 1 : index
    %c0_63 = arith.constant 0 : index
    %c0_64 = arith.constant 0 : index
    %110 = vector.load %arg7[%c1_62, %c0_63, %c0_64] : memref<2x8x1xf32, #tpu.memory_space<vmem>>, vector<1x8x1xf32>
    %111 = vector.shape_cast %110 : vector<1x8x1xf32> to vector<8x1xf32>
    %112 = vector.shape_cast %84 : vector<8x1xf32> to vector<1x8x1xf32>
    tpu.vector_store %arg7[%c1_62, %c0_63, %c0_64], %112 {strides = array<i32>} : memref<2x8x1xf32, #tpu.memory_space<vmem>>, vector<1x8x1xf32>,
    %c1_i32 = arith.constant 1 : i32
    %113 = arith.cmpi eq, %arg1, %c1_i32 : i32
    %114 = arith.extui %113 : i1 to i32
    %c0_i32_65 = arith.constant 0 : i32
    %115 = arith.cmpi ne, %114, %c0_i32_65 : i32
    scf.if %115 {
      %c0_66 = arith.constant 0 : index
      %c0_67 = arith.constant 0 : index
      %c0_68 = arith.constant 0 : index
      %116 = vector.load %arg8[%c0_66, %c0_67, %c0_68] : memref<2x8x1xf32, #tpu.memory_space<vmem>>, vector<2x8x1xf32>
      %117 = tpu.reciprocal %116 {approx = true} : vector<2x8x1xf32> -> vector<2x8x1xf32>
      %118 = arith.mulf %116, %117 : vector<2x8x1xf32>
      %cst_69 = arith.constant 2.000000e+00 : f32
      %119 = vector.broadcast %cst_69 : f32 to vector<2x8x1xf32>
      %120 = arith.subf %119, %118 : vector<2x8x1xf32>
      %121 = arith.mulf %117, %120 : vector<2x8x1xf32>
      %c0_70 = arith.constant 0 : index
      %c0_71 = arith.constant 0 : index
      %c0_72 = arith.constant 0 : index
      %122 = vector.load %arg9[%c0_70, %c0_71, %c0_72] : memref<2x8x6xf32, #tpu.memory_space<vmem>>, vector<2x8x6xf32>
      %123 = vector.broadcast %121 : vector<2x8x1xf32> to vector<2x8x6xf32>
      %124 = arith.mulf %122, %123 : vector<2x8x6xf32>
      %c0_73 = arith.constant 0 : index
      %c0_74 = arith.constant 0 : index
      %c0_75 = arith.constant 0 : index
      %125 = vector.load %arg6[%c0_73, %c0_74, %c0_75] : memref<2x8x6xf32, #tpu.memory_space<vmem>>, vector<2x8x6xf32>
      tpu.vector_store %arg6[%c0_73, %c0_74, %c0_75], %124 {strides = array<i32>} : memref<2x8x6xf32, #tpu.memory_space<vmem>>, vector<2x8x6xf32>,
    } else {
    }
    return
  }
  func.func @transform_0(%arg0: i32, %arg1: i32) -> (i32, i32, i32) {
    %c0_i32 = arith.constant 0 : i32
    %c0_i32_0 = arith.constant 0 : i32
    %c0_i32_1 = arith.constant 0 : i32
    return %arg0, %c0_i32, %c0_i32_0 : i32, i32, i32
  }
  func.func @transform_1(%arg0: i32, %arg1: i32) -> (i32, i32, i32) {
    %c0_i32 = arith.constant 0 : i32
    %c0_i32_0 = arith.constant 0 : i32
    return %arg0, %c0_i32, %arg1 : i32, i32, i32
  }
  func.func @transform_2(%arg0: i32, %arg1: i32) -> (i32, i32, i32) {
    %c0_i32 = arith.constant 0 : i32
    %c0_i32_0 = arith.constant 0 : i32
    return %arg0, %arg1, %c0_i32 : i32, i32, i32
  }
  func.func @transform_3(%arg0: i32, %arg1: i32) -> (i32, i32) {
    %c0_i32 = arith.constant 0 : i32
    %c0_i32_0 = arith.constant 0 : i32
    %c0_i32_1 = arith.constant 0 : i32
    return %c0_i32, %c0_i32_0 : i32, i32
  }
  func.func @transform_4(%arg0: i32, %arg1: i32) -> (i32, i32, i32) {
    %c0_i32 = arith.constant 0 : i32
    %c0_i32_0 = arith.constant 0 : i32
    %c0_i32_1 = arith.constant 0 : i32
    return %arg0, %c0_i32, %c0_i32_0 : i32, i32, i32
  }
}

</mosaic_0001>

<bundles_post_ra>
// kernel: tpu_custom_call.1
= control target key start
LH: loop header
LB: loop body
LE: loop exit
PB: predicated region body
PF: predicated region fallthrough
CT: control target
= control target key end

     0   :  { %s2005_s15 = smov 0   ;;  %s2007_s16 = smov 0   ;;  %s2763_s0 = inlined_call_operand.vmem [shape: f32[2,8,32], index: 0, kind: input, shape index: {}]   ;;  %s2764_s1 = inlined_call_operand.vmem [shape: f32[2,32,256], index: 1, kind: input, shape index: {}]   ;;  %s2765_s2 = inlined_call_operand.vmem [shape: f32[2,256,6], index: 2, kind: input, shape index: {}]   ;;  %s2766_s3 = inlined_call_operand.vmem [shape: f32[32,1], index: 3, kind: input, shape index: {}]   ;;  %s2767_s4 = inlined_call_operand.vmem [shape: f32[2,8,6], index: 4, kind: output, shape index: {}]  }
   0x1   :  { %s2009_s17 = smov 0   ;;  %s2011_s18 = smov 0  }
   0x2   :  { %s2013_s19 = smov 0  }
   0x3 LB: > { %s23_s20 = sadd.s32 1, %s1968_s18  ;;  %p68_p1 = scmp.ne.s32.totalorder %s1960_s16, %s1956_s15  ;;  %s1972_s19 = sphi %s2013_s19, %s14_s19   ;;  %s1968_s18 = sphi %s2011_s18, %s2808_s18   ;;  %s1964_s17 = sphi %s2009_s17, %s2807_s17   ;;  %s1960_s16 = sphi %s2007_s16, %s2806_s16   ;;  %s1956_s15 = sphi %s2005_s15, %s2805_s15  }
   0x4   : > { %p24_p0 = scmp.ge.s32.totalorder %s23_s20, 2  ;;  %p69_p2 = scmp.eq.s32.totalorder %s1972_s19, 0 }
   0x5   : > { %s61_s23 = sadd.s32 1, %s1960_s16  ;;  %p1603_p5 = scmp.ge.s32.totalorder %s1972_s19, 2 }
   0x6   : > { %s2810_s20 = smov (%p24_p0, %s23_s20), 0  ;;  %p2036_p3 = por %p69_p2, %p68_p1 }
   0x7   : > { %s57_s22 = ssub.s32 %s1968_s18, %s2810_s20  ;;  %181 = sbr.rel (%p1603_p5) target bundleno = 40 (0x28), region = 24 }
   0x8   : > { %p59_p4 = scmp.eq.s32.totalorder %s57_s22, 0 }
   0xa   : > { %s2044_s24 = scalar_select %p59_p4, %s1960_s16, %s61_s23  }
   0xc   : > { %184 = sbr.rel (!%p2036_p3) target bundleno = 20 (0x14), region = 28  ;;  %s186_s25 = sand.u32 (%p2036_p3), 1, %s1960_s16  }
   0xd   : > { %s1605_s26 = sshll.u32 (%p2036_p3), %s1968_s18, 3  ;;  %s1604_s27 = sshll.u32 (%p2036_p3), %s186_s25, 6 }
   0xe   : > { %s193_s30 = scalar_lea.vmem (%p2036_p3), %s2764_s1, %s1605_s26  ;;  %s188_s5 = scalar_lea.vmem (%p2036_p3), [#allocation5], %s1604_s27 }
   0xf   : > { %v236_v0 = vld [vmem:[%s193_s30] sm:$0xff] (%p2036_p3)  ;;  %v238_v1 = vld [vmem:[%s193_s30 + $0x10] sm:$0xff] (%p2036_p3) }
  0x10   : > { %v240_v2 = vld [vmem:[%s193_s30 + $0x20] sm:$0xff] (%p2036_p3)  ;;  %237 = vst [vmem:[%s188_s5] sm:$0xff] (%p2036_p3), %v236_v0  ;;  %239 = vst [vmem:[%s188_s5 + $0x8] sm:$0xff] (%p2036_p3), %v238_v1  ;;  %v242_v3 = vld [vmem:[%s193_s30 + $0x30] sm:$0xff] (%p2036_p3) }
  0x11   : > { %241 = vst [vmem:[%s188_s5 + $0x10] sm:$0xff] %v240_v2  ;;  %v244_v4 = vld [vmem:[%s193_s30 + $0x40] sm:$0xff]  ;;  %v246_v5 = vld [vmem:[%s193_s30 + $0x50] sm:$0xff]  ;;  %243 = vst [vmem:[%s188_s5 + $0x18] sm:$0xff] %v242_v3 }
  0x12   : > { %245 = vst [vmem:[%s188_s5 + $0x20] sm:$0xff] %v244_v4  ;;  %247 = vst [vmem:[%s188_s5 + $0x28] sm:$0xff] %v246_v5  ;;  %v248_v6 = vld [vmem:[%s193_s30 + $0x60] sm:$0xff]  ;;  %v250_v7 = vld [vmem:[%s193_s30 + $0x70] sm:$0xff] }
  0x13   : > { %249 = vst [vmem:[%s188_s5 + $0x30] sm:$0xff] %v248_v6  ;;  %251 = vst [vmem:[%s188_s5 + $0x38] sm:$0xff] %v250_v7 }
  0x14 PF: > { %257 = sbr.rel (!%p2036_p3) target bundleno = 40 (0x28), region = 66  ;;  %s259_s6 = sand.u32 (%p2036_p3), 1, %s1960_s16  }
  0x15   : > { %s1640_s7 = sshll.u32 (%p2036_p3), %s1968_s18, 7  ;;  %s1606_s8 = sshll.u32 (%p2036_p3), %s259_s6, 8 }
  0x16   : > { %s2061_s11 = scalar_lea.vmem (%p2036_p3), %s2765_s2, %s1640_s7  ;;  %s2066_s12 = scalar_lea.vmem (%p2036_p3), [#allocation6], %s1606_s8 }
  0x17   : > { %v358_v8 = vld [vmem:[%s2061_s11] sm:$0xff] (%p2036_p3)  ;;  %v360_v9 = vld [vmem:[%s2061_s11 + $0x8] sm:$0xff] (%p2036_p3)  ;;  %v362_v10 = vld [vmem:[%s2061_s11 + $0x10] sm:$0xff] (%p2036_p3) }
  0x18   : > { %359 = vst [vmem:[%s2066_s12] sm:$0xff] (%p2036_p3), %v358_v8  ;;  %361 = vst [vmem:[%s2066_s12 + $0x8] sm:$0xff] (%p2036_p3), %v360_v9  ;;  %v364_v11 = vld [vmem:[%s2061_s11 + $0x18] sm:$0xff] (%p2036_p3)  ;;  %v366_v12 = vld [vmem:[%s2061_s11 + $0x20] sm:$0xff] (%p2036_p3) }
  0x19   : > { %363 = vst [vmem:[%s2066_s12 + $0x10] sm:$0xff] %v362_v10  ;;  %v368_v13 = vld [vmem:[%s2061_s11 + $0x28] sm:$0xff]  ;;  %365 = vst [vmem:[%s2066_s12 + $0x18] sm:$0xff] %v364_v11  ;;  %v370_v14 = vld [vmem:[%s2061_s11 + $0x30] sm:$0xff] }
  0x1a   : > { %367 = vst [vmem:[%s2066_s12 + $0x20] sm:$0xff] %v366_v12  ;;  %369 = vst [vmem:[%s2066_s12 + $0x28] sm:$0xff] %v368_v13  ;;  %v372_v15 = vld [vmem:[%s2061_s11 + $0x38] sm:$0xff]  ;;  %v374_v16 = vld [vmem:[%s2061_s11 + $0x40] sm:$0xff] }
  0x1b   : > { %371 = vst [vmem:[%s2066_s12 + $0x30] sm:$0xff] %v370_v14  ;;  %373 = vst [vmem:[%s2066_s12 + $0x38] sm:$0xff] %v372_v15  ;;  %v376_v17 = vld [vmem:[%s2061_s11 + $0x48] sm:$0xff]  ;;  %v378_v18 = vld [vmem:[%s2061_s11 + $0x50] sm:$0xff] }
  0x1c   : > { %375 = vst [vmem:[%s2066_s12 + $0x40] sm:$0xff] %v374_v16  ;;  %v380_v19 = vld [vmem:[%s2061_s11 + $0x58] sm:$0xff]  ;;  %377 = vst [vmem:[%s2066_s12 + $0x48] sm:$0xff] %v376_v17  ;;  %v382_v20 = vld [vmem:[%s2061_s11 + $0x60] sm:$0xff] }
  0x1d   : > { %379 = vst [vmem:[%s2066_s12 + $0x50] sm:$0xff] %v378_v18  ;;  %381 = vst [vmem:[%s2066_s12 + $0x58] sm:$0xff] %v380_v19  ;;  %v384_v21 = vld [vmem:[%s2061_s11 + $0x68] sm:$0xff]  ;;  %v386_v22 = vld [vmem:[%s2061_s11 + $0x70] sm:$0xff] }
  0x1e   : > { %383 = vst [vmem:[%s2066_s12 + $0x60] sm:$0xff] %v382_v20  ;;  %385 = vst [vmem:[%s2066_s12 + $0x68] sm:$0xff] %v384_v21  ;;  %v388_v23 = vld [vmem:[%s2061_s11 + $0x78] sm:$0xff]  ;;  %v390_v24 = vld [vmem:[%s2061_s11 + $0x100] sm:$0xff] }
  0x1f   : > { %387 = vst [vmem:[%s2066_s12 + $0x70] sm:$0xff] %v386_v22  ;;  %v392_v25 = vld [vmem:[%s2061_s11 + $0x108] sm:$0xff]  ;;  %389 = vst [vmem:[%s2066_s12 + $0x78] sm:$0xff] %v388_v23  ;;  %v394_v26 = vld [vmem:[%s2061_s11 + $0x110] sm:$0xff] }
  0x20   : > { %391 = vst [vmem:[%s2066_s12 + $0x80] sm:$0xff] %v390_v24  ;;  %393 = vst [vmem:[%s2066_s12 + $0x88] sm:$0xff] %v392_v25  ;;  %v396_v27 = vld [vmem:[%s2061_s11 + $0x118] sm:$0xff]  ;;  %v398_v28 = vld [vmem:[%s2061_s11 + $0x120] sm:$0xff] }
  0x21   : > { %395 = vst [vmem:[%s2066_s12 + $0x90] sm:$0xff] %v394_v26  ;;  %397 = vst [vmem:[%s2066_s12 + $0x98] sm:$0xff] %v396_v27  ;;  %v400_v29 = vld [vmem:[%s2061_s11 + $0x128] sm:$0xff]  ;;  %v402_v30 = vld [vmem:[%s2061_s11 + $0x130] sm:$0xff] }
  0x22   : > { %399 = vst [vmem:[%s2066_s12 + $0xa0] sm:$0xff] %v398_v28  ;;  %v404_v31 = vld [vmem:[%s2061_s11 + $0x138] sm:$0xff]  ;;  %401 = vst [vmem:[%s2066_s12 + $0xa8] sm:$0xff] %v400_v29  ;;  %v406_v32 = vld [vmem:[%s2061_s11 + $0x140] sm:$0xff] }
  0x23   : > { %403 = vst [vmem:[%s2066_s12 + $0xb0] sm:$0xff] %v402_v30  ;;  %405 = vst [vmem:[%s2066_s12 + $0xb8] sm:$0xff] %v404_v31  ;;  %v408_v33 = vld [vmem:[%s2061_s11 + $0x148] sm:$0xff]  ;;  %v410_v34 = vld [vmem:[%s2061_s11 + $0x150] sm:$0xff] }
  0x24   : > { %407 = vst [vmem:[%s2066_s12 + $0xc0] sm:$0xff] %v406_v32  ;;  %409 = vst [vmem:[%s2066_s12 + $0xc8] sm:$0xff] %v408_v33  ;;  %v412_v35 = vld [vmem:[%s2061_s11 + $0x158] sm:$0xff]  ;;  %v414_v36 = vld [vmem:[%s2061_s11 + $0x160] sm:$0xff] }
  0x25   : > { %411 = vst [vmem:[%s2066_s12 + $0xd0] sm:$0xff] %v410_v34  ;;  %v416_v37 = vld [vmem:[%s2061_s11 + $0x168] sm:$0xff]  ;;  %413 = vst [vmem:[%s2066_s12 + $0xd8] sm:$0xff] %v412_v35  ;;  %v418_v38 = vld [vmem:[%s2061_s11 + $0x170] sm:$0xff] }
  0x26   : > { %415 = vst [vmem:[%s2066_s12 + $0xe0] sm:$0xff] %v414_v36  ;;  %417 = vst [vmem:[%s2066_s12 + $0xe8] sm:$0xff] %v416_v37  ;;  %v420_v39 = vld [vmem:[%s2061_s11 + $0x178] sm:$0xff] }
  0x27   : > { %419 = vst [vmem:[%s2066_s12 + $0xf0] sm:$0xff] %v418_v38  ;;  %421 = vst [vmem:[%s2066_s12 + $0xf8] sm:$0xff] %v420_v39 }
  0x28 PF: > { %p1609_p6 = scmp.ge.s32.totalorder %s1972_s19, 1  ;;  %p426_p7 = scmp.lt.s32.totalorder %s1972_s19, 3 }
  0x2a   : > { %p427_p8 = pnand %p1609_p6, %p426_p7 }
  0x2c   : > { %430 = sbr.rel (%p427_p8) target bundleno = 1013 (0x3f5), region = 104 }
  0x31   : > { %s433_s13 = sand.u32 1, %s1956_s15   ;;  %p1612_p9 = scmp.ne.s32.totalorder %s1964_s17, 0 }
  0x32   : > { %s1610_s14 = sshll.u32 %s433_s13, 6  ;;  %s1611_s21 = sshll.u32 %s433_s13, 8 }
  0x33   : > { %s2132_s22 = scalar_lea.vmem [#allocation5], %s1610_s14  ;;  %s2134_s23 = scalar_lea.vmem [#allocation6], %s1611_s21 }
  0x34   : > { %492 = sbr.rel (%p1612_p9) target bundleno = 61 (0x3d), region = 116 }
  0x39   : > { %vm493_vm0 = vcmask 7168   ;;  %vm498_vm1 = vcmask 48128   ;;  %v1974_v40 = vmov -inf   ;;  %v1975_v41 = vmov 0.0  }
  0x3a   : > { %494 = vst.msk [vmem:[#allocation2] sm:$0xff] %vm493_vm0, %v1974_v40  ;;  %495 = vst.msk [vmem:[#allocation2 + $0x8] sm:$0xff] %vm493_vm0, %v1974_v40 }
  0x3b   : > { %496 = vst.msk [vmem:[#allocation3] sm:$0xff] %vm493_vm0, %v1975_v41  ;;  %497 = vst.msk [vmem:[#allocation3 + $0x8] sm:$0xff] %vm493_vm0, %v1975_v41 }
  0x3c   : > { %499 = vst.msk [vmem:[#allocation4] sm:$0xff] %vm498_vm1, %v1975_v41  ;;  %500 = vst.msk [vmem:[#allocation4 + $0x8] sm:$0xff] %vm498_vm1, %v1975_v41 }
  0x3d PF: > { %v511_v42 = vlaneseq  ;;  %v506_v44 = vld [vmem:[%s2763_s0] sm:$0xff]  ;;  %v1614_v51 = vld [vmem:[%s2763_s0 + $0x8] sm:$0xff]  ;;  %v1976_v55 = vmov 0   ;;  %v503_v17 = vld [vmem:[%s2766_s3 + $0x10] sm:$0xff]  ;;  %s1613_s10 = sshll.u32 %s1964_s17, 7  ;;  %vm864_vm2 = vcmask 1041409  }
  0x3e   : > { %1792 = vset.pattern.permute.xlu1 %v1976_v55  ;;  %1791 = vset.pattern.permute.xlu0 %v1976_v55  ;;  %v502_v13 = vld [vmem:[%s2766_s3 + $0x8] sm:$0xff]  ;;  %v501_v14 = vld [vmem:[%s2766_s3] sm:$0xff]  ;;  %v504_v18 = vld [vmem:[%s2766_s3 + $0x18] sm:$0xff]  ;;  %vm866_vm3 = vcmask 1042434   ;;  %vm868_vm4 = vcmask 1043459   ;;  %vm870_vm5 = vcmask 1044484  }
  0x3f   : > { %v2138_v43 = vshrl.u32 %v511_v42, 7  ;;  %vm872_vm6 = vcmask 1045509   ;;  %vm874_vm7 = vcmask 1046534   ;;  %vm876_vm8 = vcmask 1047559   ;;  %p1635_p10 = scmp.ne.s32.totalorder %s1964_s17, 1 }
  0x40   : > { %vm900_vm10 = vcmask 7168   ;;  %vm1978_vm11 = vmmov 0   ;;  %vm996_vm12 = vcmask 48128  }
  0x41   : > { %v532_v45 = vsub.s32 1, %v2138_v43  ;;  %v513_v46 = vsub.s32 0, %v2138_v43  ;;  %v627_v47 = vsub.s32 6, %v2138_v43  ;;  %v646_v48 = vsub.s32 7, %v2138_v43 }
  0x42   : > { %v551_v59 = vsub.s32 2, %v2138_v43  ;;  %v570_v62 = vsub.s32 3, %v2138_v43  ;;  %v589_v1 = vsub.s32 4, %v2138_v43  ;;  %v608_v4 = vsub.s32 5, %v2138_v43 }
  0x43   : > { %v533_v49 = vrot.slane %v506_v44, %v532_v45  ;;  %v514_v50 = vrot.slane %v506_v44, %v513_v46  ;;  %v2150_v52 = vrot.slane %v506_v44, %v627_v47  ;;  %v2152_v53 = vrot.slane %v1614_v51, %v627_v47 }
  0x44   : > { %v2154_v54 = vrot.slane %v506_v44, %v646_v48  ;;  %v2156_v56 = vrot.slane %v1614_v51, %v646_v48  ;;  %v1009_v57 = vrot.slane %v1614_v51, %v513_v46  ;;  %v1028_v58 = vrot.slane %v1614_v51, %v532_v45  ;;  %v2227_v46 = vld [vmem:[%s2132_s22] sm:$0xff] }
  0x45   : > { %535 = vbcast.lane.b32.xlu1 %v533_v49, 256  ;;  %516 = vbcast.lane.b32.xlu0 %v514_v50, 256  ;;  %v552_v60 = vrot.slane %v506_v44, %v551_v59  ;;  %v1047_v61 = vrot.slane %v1614_v51, %v551_v59  ;;  %v571_v63 = vrot.slane %v506_v44, %v570_v62 }
  0x46   : > { %v1066_v0 = vrot.slane %v1614_v51, %v570_v62  ;;  %v590_v2 = vrot.slane %v506_v44, %v589_v1  ;;  %v1085_v3 = vrot.slane %v1614_v51, %v589_v1  ;;  %v609_v5 = vrot.slane %v506_v44, %v608_v4 }
  0x47   : > { %v1104_v6 = vrot.slane %v1614_v51, %v608_v4 }
  0x49   : > { %539 = vbcast.lane.b32.xlu1 %v533_v49, 264  ;;  %520 = vbcast.lane.b32.xlu0 %v514_v50, 264 }
  0x4d   : > { %1015 = vbcast.lane.b32.xlu1 %v1009_v57, 264  ;;  %1011 = vbcast.lane.b32.xlu0 %v1009_v57, 256 }
  0x51   : > { %1034 = vbcast.lane.b32.xlu1 %v1028_v58, 264  ;;  %1030 = vbcast.lane.b32.xlu0 %v1028_v58, 256 }
  0x55   : > { %558 = vbcast.lane.b32.xlu1 %v552_v60, 264  ;;  %554 = vbcast.lane.b32.xlu0 %v552_v60, 256 }
  0x59   : > { %1053 = vbcast.lane.b32.xlu1 %v1047_v61, 264  ;;  %1049 = vbcast.lane.b32.xlu0 %v1047_v61, 256 }
  0x5d   : > { %543 = vbcast.lane.b32.xlu1 %v533_v49, 272  ;;  %524 = vbcast.lane.b32.xlu0 %v514_v50, 272 }
  0x61   : > { %577 = vbcast.lane.b32.xlu1 %v571_v63, 264  ;;  %573 = vbcast.lane.b32.xlu0 %v571_v63, 256 }
  0x65   : > { %1038 = vbcast.lane.b32.xlu1 %v1028_v58, 272  ;;  %1019 = vbcast.lane.b32.xlu0 %v1009_v57, 272 }
  0x69   : > { %1072 = vbcast.lane.b32.xlu1 %v1066_v0, 264  ;;  %1068 = vbcast.lane.b32.xlu0 %v1066_v0, 256 }
  0x6d   : > { %592 = vbcast.lane.b32.xlu1 %v590_v2, 256  ;;  %562 = vbcast.lane.b32.xlu0 %v552_v60, 272 }
  0x71   : > { %1057 = vbcast.lane.b32.xlu1 %v1047_v61, 272  ;;  %596 = vbcast.lane.b32.xlu0 %v590_v2, 264 }
  0x75   : > { %1091 = vbcast.lane.b32.xlu1 %v1085_v3, 264  ;;  %1087 = vbcast.lane.b32.xlu0 %v1085_v3, 256 }
  0x79   : > { %547 = vbcast.lane.b32.xlu1 %v533_v49, 280  ;;  %528 = vbcast.lane.b32.xlu0 %v514_v50, 280  ;;  %v2234_v49 = vld [vmem:[%s2132_s22 + $0x8] sm:$0xff] }
  0x7d   : > { %611 = vbcast.lane.b32.xlu1 %v609_v5, 256  ;;  %581 = vbcast.lane.b32.xlu0 %v571_v63, 272 }
  0x81   : > { %1023 = vbcast.lane.b32.xlu1 %v1009_v57, 280  ;;  %615 = vbcast.lane.b32.xlu0 %v609_v5, 264 }
  0x85   : > { %1076 = vbcast.lane.b32.xlu1 %v1066_v0, 272  ;;  %1042 = vbcast.lane.b32.xlu0 %v1028_v58, 280 }
  0x89   : > { %1110 = vbcast.lane.b32.xlu1 %v1104_v6, 264  ;;  %1106 = vbcast.lane.b32.xlu0 %v1104_v6, 256 }
  0x8d   : > { %600 = vbcast.lane.b32.xlu1 %v590_v2, 272  ;;  %566 = vbcast.lane.b32.xlu0 %v552_v60, 280 }
  0x91   : > { %634 = vbcast.lane.b32.xlu1 %v2150_v52, 264  ;;  %630 = vbcast.lane.b32.xlu0 %v2150_v52, 256 }
  0x95   : > { %1095 = vbcast.lane.b32.xlu1 %v1085_v3, 272  ;;  %1061 = vbcast.lane.b32.xlu0 %v1047_v61, 280 }
  0x99   : > { %1129 = vbcast.lane.b32.xlu1 %v2152_v53, 264  ;;  %1125 = vbcast.lane.b32.xlu0 %v2152_v53, 256 }
  0x9d   : > { %619 = vbcast.lane.b32.xlu1 %v609_v5, 272  ;;  %585 = vbcast.lane.b32.xlu0 %v571_v63, 280 }
  0xa1   : > { %653 = vbcast.lane.b32.xlu1 %v2154_v54, 264  ;;  %649 = vbcast.lane.b32.xlu0 %v2154_v54, 256 }
  0xa5   : > { %1114 = vbcast.lane.b32.xlu1 %v1104_v6, 272  ;;  %1080 = vbcast.lane.b32.xlu0 %v1066_v0, 280 }
  0xa9   : > { %1148 = vbcast.lane.b32.xlu1 %v2156_v56, 264  ;;  %1144 = vbcast.lane.b32.xlu0 %v2156_v56, 256 }
  0xad   : > { %638 = vbcast.lane.b32.xlu1 %v2150_v52, 272  ;;  %604 = vbcast.lane.b32.xlu0 %v590_v2, 280  ;;  %v2261_v2 = vld [vmem:[%s2132_s22 + $0x10] sm:$0xff] }
  0xb1   : > { %1133 = vbcast.lane.b32.xlu1 %v2152_v53, 272  ;;  %1099 = vbcast.lane.b32.xlu0 %v1085_v3, 280 }
  0xb5   : > { %657 = vbcast.lane.b32.xlu1 %v2154_v54, 272  ;;  %623 = vbcast.lane.b32.xlu0 %v609_v5, 280 }
  0xb7   : > { %v536_v7 = vpop.permute.xlu1 %535  ;;  %v517_v8 = vpop.permute.xlu0 %516 }
  0xb8   : > { %v667_v50 = vadd.f32 %v536_v7, %v2227_v46  ;;  %v663_v51 = vadd.f32 %v517_v8, %v2227_v46 }
  0xb9   : > { %1152 = vbcast.lane.b32.xlu1 %v2156_v56, 272  ;;  %1118 = vbcast.lane.b32.xlu0 %v1104_v6, 280 }
  0xba   : > { %1793 = vtanh.f32 %v667_v50 }
  0xbb   : > { %v540_v9 = vpop.permute.xlu1 %539  ;;  %v521_v10 = vpop.permute.xlu0 %520  ;;  %1795 = vtanh.f32 %v663_v51  ;;  %v2319_v51 = vld [vmem:[%s2132_s22 + $0x18] sm:$0xff] }
  0xbc   : > { %v664_v57 = vadd.f32 %v521_v10, %v2234_v49 }
  0xbd   : > { %1137 = vbcast.lane.b32.xlu1 %v2152_v53, 280  ;;  %642 = vbcast.lane.b32.xlu0 %v2150_v52, 280  ;;  %v2239_v52 = vld [vmem:[%s2132_s22 + $0x28] sm:$0xff]  ;;  %v668_v53 = vadd.f32 %v540_v9, %v2234_v49  ;;  %v2272_v9 = vld [vmem:[%s2132_s22 + $0x30] sm:$0xff] }
  0xbf   : > { %v1016_v11 = vpop.permute.xlu1 %1015  ;;  %v1012_v12 = vpop.permute.xlu0 %1011  ;;  %1797 = vtanh.f32 %v668_v53 }
  0xc0   : > { %v1159_v58 = vadd.f32 %v2239_v52, %v1016_v11  ;;  %1799 = vtanh.f32 %v664_v57 }
  0xc1   : > { %1156 = vbcast.lane.b32.xlu1 %v2156_v56, 280  ;;  %661 = vbcast.lane.b32.xlu0 %v2154_v54, 280  ;;  %v2243_v54 = vld [vmem:[%s2132_s22 + $0x20] sm:$0xff] }
  0xc2   : > { %v1158_v59 = vadd.f32 %v2243_v54, %v1012_v12  ;;  %1801 = vtanh.f32 %v1159_v58 }
  0xc3   : > { %v1035_v15 = vpop.permute.xlu1 %1034  ;;  %v1031_v16 = vpop.permute.xlu0 %1030 }
  0xc4   : > { %v1163_v60 = vadd.f32 %v2239_v52, %v1035_v15  ;;  %v1162_v63 = vadd.f32 %v2243_v54, %v1031_v16  ;;  %1803 = vtanh.f32 %v1158_v59 }
  0xc5   : > { %734 = vperm.xlu1 %1792, %v502_v13   ;;  %729 = vperm.xlu0 %1791, %v501_v14  }
  0xc6   : > { %1805 = vtanh.f32 %v1163_v60 }
  0xc7   : > { %v559_v19 = vpop.permute.xlu1 %558  ;;  %v555_v20 = vpop.permute.xlu0 %554  ;;  %1807 = vtanh.f32 %v1162_v63 }
  0xc8   : > { %v672_v0 = vadd.f32 %v559_v19, %v2234_v49  ;;  %v671_v1 = vadd.f32 %v555_v20, %v2227_v46  ;;  %v2282_v15 = vpop.eup %1793 }
  0xc9   : > { %739 = vperm.xlu1 %1792, %v503_v17   ;;  %744 = vperm.xlu0 %1791, %v504_v18   ;;  %v2286_v17 = vpop.eup %1795 }
  0xca   : > { %1809 = vtanh.f32 %v672_v0  ;;  %v2342_v0 = vld [vmem:[%s2132_s22 + $0x38] sm:$0xff] }
  0xcb   : > { %v1054_v21 = vpop.permute.xlu1 %1053  ;;  %v1050_v22 = vpop.permute.xlu0 %1049  ;;  %1811 = vtanh.f32 %v671_v1 }
  0xcc   : > { %v1167_v3 = vadd.f32 %v2239_v52, %v1054_v21  ;;  %v1166_v6 = vadd.f32 %v2243_v54, %v1050_v22  ;;  %v2294_v21 = vpop.eup %1797 }
  0xce   : > { %1813 = vtanh.f32 %v1167_v3 }
  0xcf   : > { %v544_v23 = vpop.permute.xlu1 %543  ;;  %v525_v24 = vpop.permute.xlu0 %524  ;;  %1815 = vtanh.f32 %v1166_v6 }
  0xd0   : > { %v669_v7 = vadd.f32 %v544_v23, %v2261_v2  ;;  %v665_v8 = vadd.f32 %v525_v24, %v2261_v2  ;;  %v2298_v23 = vpop.eup %1799 }
  0xd2   : > { %1817 = vtanh.f32 %v669_v7 }
  0xd3   : > { %v578_v25 = vpop.permute.xlu1 %577  ;;  %v574_v26 = vpop.permute.xlu0 %573  ;;  %1819 = vtanh.f32 %v665_v8 }
  0xd4   : > { %v676_v10 = vadd.f32 %v578_v25, %v2234_v49  ;;  %v675_v13 = vadd.f32 %v574_v26, %v2227_v46  ;;  %v2302_v25 = vpop.eup %1801 }
  0xd6   : > { %1821 = vtanh.f32 %v676_v10 }
  0xd7   : > { %v2190_v27 = vpop.permute.xlu1 %1038  ;;  %v2192_v28 = vpop.permute.xlu0 %1019  ;;  %1823 = vtanh.f32 %v675_v13 }
  0xd8   : > { %v1164_v14 = vadd.f32 %v2272_v9, %v2190_v27  ;;  %v1160_v16 = vadd.f32 %v2272_v9, %v2192_v28  ;;  %v2306_v27 = vpop.eup %1803 }
  0xd9   : > { %v2314_v50 = vpop.eup %1805 }
  0xda   : > { %1825 = vtanh.f32 %v1164_v14 }
  0xdb   : > { %v2194_v29 = vpop.permute.xlu1 %1072  ;;  %v2196_v30 = vpop.permute.xlu0 %1068  ;;  %1827 = vtanh.f32 %v1160_v16 }
  0xdc   : > { %v1171_v18 = vadd.f32 %v2239_v52, %v2194_v29  ;;  %v1170_v22 = vadd.f32 %v2243_v54, %v2196_v30 }
  0xde   : > { %1829 = vtanh.f32 %v1171_v18 }
  0xdf   : > { %v2198_v31 = vpop.permute.xlu1 %592  ;;  %v2200_v32 = vpop.permute.xlu0 %562  ;;  %1831 = vtanh.f32 %v1170_v22 }
  0xe0   : > { %v679_v24 = vadd.f32 %v2198_v31, %v2227_v46  ;;  %v673_v26 = vadd.f32 %v2200_v32, %v2261_v2  ;;  %v2321_v32 = vpop.eup %1807 }
  0xe2   : > { %1833 = vtanh.f32 %v679_v24 }
  0xe3   : > { %v2202_v33 = vpop.permute.xlu1 %1057  ;;  %v2204_v34 = vpop.permute.xlu0 %596  ;;  %1835 = vtanh.f32 %v673_v26 }
  0xe4   : > { %v1168_v28 = vadd.f32 %v2272_v9, %v2202_v33  ;;  %v680_v31 = vadd.f32 %v2204_v34, %v2234_v49  ;;  %v2325_v33 = vpop.eup %1809 }
  0xe5   : > { %v2329_v58 = vpop.eup %1811 }
  0xe6   : > { %1837 = vtanh.f32 %v1168_v28  ;;  %v2337_v63 = vpop.eup %1813 }
  0xe7   : > { %v2206_v35 = vpop.permute.xlu1 %1091  ;;  %v2208_v36 = vpop.permute.xlu0 %1087  ;;  %1839 = vtanh.f32 %v680_v31 }
  0xe8   : > { %v1175_v53 = vadd.f32 %v2239_v52, %v2206_v35  ;;  %v1174_v57 = vadd.f32 %v2243_v54, %v2208_v36  ;;  %v2344_v1 = vpop.eup %1815 }
  0xe9   : > { %v2348_v3 = vpop.eup %1817 }
  0xea   : > { %1841 = vtanh.f32 %v1175_v53  ;;  %v2352_v6 = vpop.eup %1819 }
  0xeb   : > { %v2210_v37 = vpop.permute.xlu1 %547  ;;  %v2212_v38 = vpop.permute.xlu0 %528  ;;  %1843 = vtanh.f32 %v1174_v57 }
  0xec   : > { %v670_v34 = vadd.f32 %v2210_v37, %v2319_v51  ;;  %v666_v35 = vadd.f32 %v2212_v38, %v2319_v51  ;;  %v2360_v10 = vpop.eup %1821 }
  0xed   : > { %v2364_v13 = vpop.eup %1823 }
  0xee   : > { %1845 = vtanh.f32 %v670_v34  ;;  %v2368_v14 = vpop.eup %1825 }
  0xef   : > { %v2214_v39 = vpop.permute.xlu1 %611  ;;  %v2216_v40 = vpop.permute.xlu0 %581  ;;  %1847 = vtanh.f32 %v666_v35 }
  0xf0   : > { %v683_v36 = vadd.f32 %v2214_v39, %v2227_v46  ;;  %v677_v37 = vadd.f32 %v2216_v40, %v2261_v2  ;;  %v2372_v16 = vpop.eup %1827 }
  0xf1   : > { %v2378_v24 = vpop.eup %1829 }
  0xf2   : > { %1849 = vtanh.f32 %v683_v36  ;;  %2769 = vst [vmem:[#allocation7_spill] sm:$0xff] %v2378_v24  ;;  %v2382_v26 = vpop.eup %1831 }
  0xf3   : > { %v2218_v41 = vpop.permute.xlu1 %1023  ;;  %v2220_v43 = vpop.permute.xlu0 %615  ;;  %1851 = vtanh.f32 %v677_v37  ;;  %2770 = vst [vmem:[#allocation8_spill] sm:$0xff] %v2382_v26 }
  0xf4   : > { %v1161_v38 = vadd.f32 %v2342_v0, %v2218_v41  ;;  %v684_v39 = vadd.f32 %v2220_v43, %v2234_v49  ;;  %v2386_v28 = vpop.eup %1833 }
  0xf5   : > { %v2390_v31 = vpop.eup %1835 }
  0xf6   : > { %1853 = vtanh.f32 %v1161_v38  ;;  %v2398_v34 = vpop.eup %1837 }
  0xf7   : > { %v2222_v44 = vpop.permute.xlu1 %1076  ;;  %v2224_v45 = vpop.permute.xlu0 %1042  ;;  %1855 = vtanh.f32 %v684_v39  ;;  %2771 = vst [vmem:[#allocation9_spill] sm:$0xff] %v2398_v34 }
  0xf8   : > { %v1172_v40 = vadd.f32 %v2272_v9, %v2222_v44  ;;  %v1165_v41 = vadd.f32 %v2342_v0, %v2224_v45  ;;  %v2402_v35 = vpop.eup %1839 }
  0xf9   : > { %v2406_v36 = vpop.eup %1841 }
  0xfa   : > { %1857 = vtanh.f32 %v1172_v40  ;;  %2772 = vst [vmem:[#allocation10_spill] sm:$0xff] %v2406_v36  ;;  %v2410_v37 = vpop.eup %1843 }
  0xfb   : > { %v2229_v47 = vpop.permute.xlu1 %1110  ;;  %v2231_v48 = vpop.permute.xlu0 %1106  ;;  %1859 = vtanh.f32 %v1165_v41  ;;  %2773 = vst [vmem:[#allocation11_spill] sm:$0xff] %v2410_v37 }
  0xfc   : > { %v1179_v18 = vadd.f32 %v2239_v52, %v2229_v47  ;;  %v1178_v44 = vadd.f32 %v2243_v54, %v2231_v48  ;;  %v2414_v40 = vpop.eup %1845 }
  0xfd   : > { %v2418_v41 = vpop.eup %1847 }
  0xfe   : > { %1861 = vtanh.f32 %v1179_v18 }
  0xff   : > { %v2245_v55 = vpop.permute.xlu1 %600  ;;  %v2247_v56 = vpop.permute.xlu0 %566  ;;  %1863 = vtanh.f32 %v1178_v44 }
 0x100   : > { %v681_v45 = vadd.f32 %v2245_v55, %v2261_v2  ;;  %v674_v47 = vadd.f32 %v2247_v56, %v2319_v51  ;;  %v2422_v18 = vpop.eup %1849 }
 0x101   : > { %v2426_v44 = vpop.eup %1851 }
 0x102   : > { %1865 = vtanh.f32 %v681_v45 }
 0x103   : > { %v2253_v61 = vpop.permute.xlu1 %634  ;;  %v2255_v62 = vpop.permute.xlu0 %630  ;;  %1867 = vtanh.f32 %v674_v47 }
 0x104   : > { %v688_v53 = vadd.f32 %v2253_v61, %v2234_v49  ;;  %v687_v55 = vadd.f32 %v2255_v62, %v2227_v46 }
 0x106   : > { %1869 = vtanh.f32 %v688_v53 }
 0x107   : > { %v2264_v4 = vpop.permute.xlu1 %1095  ;;  %v2266_v5 = vpop.permute.xlu0 %1061  ;;  %1871 = vtanh.f32 %v687_v55 }
 0x108   : > { %v1176_v56 = vadd.f32 %v2272_v9, %v2264_v4  ;;  %v1169_v61 = vadd.f32 %v2342_v0, %v2266_v5 }
 0x10a   : > { %1873 = vtanh.f32 %v1176_v56 }
 0x10b   : > { %v2275_v11 = vpop.permute.xlu1 %1129  ;;  %v2277_v12 = vpop.permute.xlu0 %1125  ;;  %1875 = vtanh.f32 %v1169_v61 }
 0x10c   : > { %v1183_v38 = vadd.f32 %v2239_v52, %v2275_v11  ;;  %v1182_v4 = vadd.f32 %v2243_v54, %v2277_v12  ;;  %v2430_v12 = vpop.eup %1853 }
 0x10e   : > { %1877 = vtanh.f32 %v1183_v38 }
 0x10f   : > { %v2290_v19 = vpop.permute.xlu1 %619  ;;  %v2292_v20 = vpop.permute.xlu0 %585  ;;  %1879 = vtanh.f32 %v1182_v4 }
 0x110   : > { %v685_v5 = vadd.f32 %v2290_v19, %v2261_v2  ;;  %v678_v11 = vadd.f32 %v2292_v20, %v2319_v51  ;;  %v2434_v19 = vpop.eup %1855 }
 0x111   : > { %v2438_v56 = vpop.eup %1857 }
 0x112   : > { %1881 = vtanh.f32 %v685_v5  ;;  %2774 = vst [vmem:[#allocation12_spill] sm:$0xff] %v2438_v56 }
 0x113   : > { %v2310_v29 = vpop.permute.xlu1 %653  ;;  %v2312_v30 = vpop.permute.xlu0 %649  ;;  %1883 = vtanh.f32 %v678_v11 }
 0x114   : > { %v692_v45 = vadd.f32 %v2310_v29, %v2234_v49  ;;  %v691_v53 = vadd.f32 %v2312_v30, %v2227_v46  ;;  %v2442_v29 = vpop.eup %1859 }
 0x115   : > { %v2446_v30 = vpop.eup %1861 }
 0x116   : > { %1885 = vtanh.f32 %v692_v45  ;;  %2775 = vst [vmem:[#allocation13_spill] sm:$0xff] %v2446_v30  ;;  %v2450_v38 = vpop.eup %1863 }
 0x117   : > { %v2333_v59 = vpop.permute.xlu1 %1114  ;;  %v2335_v60 = vpop.permute.xlu0 %1080  ;;  %1887 = vtanh.f32 %v691_v53  ;;  %2776 = vst [vmem:[#allocation14_spill] sm:$0xff] %v2450_v38 }
 0x118   : > { %v1180_v55 = vadd.f32 %v2272_v9, %v2333_v59  ;;  %v1173_v49 = vadd.f32 %v2342_v0, %v2335_v60  ;;  %v2453_v5 = vpop.eup %1865 }
 0x119   : > { %v2457_v11 = vpop.eup %1867 }
 0x11a   : > { %1889 = vtanh.f32 %v1180_v55  ;;  %v1870_v53 = vpop.eup %1869 }
 0x11b   : > { %v2356_v7 = vpop.permute.xlu1 %1148  ;;  %v2358_v8 = vpop.permute.xlu0 %1144  ;;  %1891 = vtanh.f32 %v1173_v49 }
 0x11c   : > { %v1187_v61 = vadd.f32 %v2239_v52, %v2356_v7  ;;  %v1186_v59 = vadd.f32 %v2243_v54, %v2358_v8  ;;  %v1872_v8 = vpop.eup %1871 }
 0x11d   : > { %v2462_v55 = vpop.eup %1873 }
 0x11e   : > { %1893 = vtanh.f32 %v1187_v61  ;;  %2777 = vst [vmem:[#allocation15_spill] sm:$0xff] %v2462_v55  ;;  %v2465_v49 = vpop.eup %1875 }
 0x11f   : > { %v639_v22 = vpop.permute.xlu1 %638  ;;  %v2376_v43 = vpop.permute.xlu0 %604  ;;  %1895 = vtanh.f32 %v1186_v59  ;;  %2778 = vst [vmem:[#allocation16_spill] sm:$0xff] %v2465_v49 }
 0x120   : > { %v689_v4 = vadd.f32 %v639_v22, %v2261_v2  ;;  %v682_v60 = vadd.f32 %v2376_v43, %v2319_v51 }
 0x122   : > { %1897 = vtanh.f32 %v689_v4 }
 0x123   : > { %v2394_v57 = vpop.permute.xlu1 %1133  ;;  %v2396_v48 = vpop.permute.xlu0 %1099  ;;  %1899 = vtanh.f32 %v682_v60 }
 0x124   : > { %v1177_v61 = vadd.f32 %v2342_v0, %v2396_v48 }
 0x127   : > { %v658_v39 = vpop.permute.xlu1 %657  ;;  %v624_v62 = vpop.permute.xlu0 %623 }
 0x128   : > { %v693_v52 = vadd.f32 %v658_v39, %v2261_v2  ;;  %v686_v22 = vadd.f32 %v624_v62, %v2319_v51  ;;  %v1184_v2 = vadd.f32 %v2272_v9, %v2394_v57  ;;  %v2469_v39 = vpop.eup %1877 }
 0x129   : > { %2779 = vst [vmem:[#allocation17_spill] sm:$0xff] %v2469_v39  ;;  %v2473_v59 = vpop.eup %1879 }
 0x12a   : > { %1901 = vtanh.f32 %v693_v52  ;;  %2780 = vst [vmem:[#allocation18_spill] sm:$0xff] %v2473_v59  ;;  %v1882_v60 = vpop.eup %1881 }
 0x12b   : > { %v1119_v47 = vpop.permute.xlu0 %1118  ;;  %v1153_v20 = vpop.permute.xlu1 %1152 }
 0x12c   : > { %v1188_v62 = vadd.f32 %v2272_v9, %v1153_v20 }
 0x12f   : > { %v643_v46 = vpop.permute.xlu0 %642  ;;  %v1138_v7 = vpop.permute.xlu1 %1137 }
 0x130   : > { %v690_v43 = vadd.f32 %v643_v46, %v2319_v51  ;;  %v1884_v46 = vpop.eup %1883  ;;  %v1185_v57 = vadd.f32 %v2342_v0, %v1138_v7 }
 0x131   : > { %v1886_v52 = vpop.eup %1885 }
 0x133   : > { %v662_v45 = vpop.permute.xlu0 %661  ;;  %v1157_v4 = vpop.permute.xlu1 %1156 }
 0x134   : > { %v694_v54 = vadd.f32 %v662_v45, %v2319_v51  ;;  %v1181_v51 = vadd.f32 %v2342_v0, %v1119_v47  ;;  %v1189_v48 = vadd.f32 %v2342_v0, %v1157_v4  ;;  %v852_v45 = vand.u32 127, %v511_v42 }
 0x136   : > { %1903 = vtanh.f32 %v694_v54  ;;  %v1888_v54 = vpop.eup %1887 }
 0x137   : > { %1905 = vtanh.f32 %v686_v22  ;;  %v853_v22 = vstv %s1613_s10  ;;  %v2481_v9 = vpop.eup %1889 }
 0x138   : > { %1907 = vtanh.f32 %v690_v43  ;;  %2781 = vst [vmem:[#allocation19_spill] sm:$0xff] %v2481_v9  ;;  %v2483_v20 = vpop.eup %1891 }
 0x139   : > { %1909 = vtanh.f32 %v1184_v2  ;;  %2782 = vst [vmem:[#allocation20_spill] sm:$0xff] %v2483_v20  ;;  %v2485_v47 = vpop.eup %1893  ;;  %v2491_v2 = vadd.s32 %v853_v22, %v852_v45 }
 0x13a   : > { %1911 = vtanh.f32 %v1177_v61  ;;  %2783 = vst [vmem:[#allocation21_spill] sm:$0xff] %v2485_v47  ;;  %v2493_v0 = vpop.eup %1895 }
 0x13b   : > { %1913 = vtanh.f32 %v1188_v62  ;;  %2784 = vst [vmem:[#allocation22_spill] sm:$0xff] %v2493_v0  ;;  %vm855_vm9 = vcmp.lt.s32.totalorder %v2491_v2, 150  ;;  %v922_v2 = vld [vmem:[%s2134_s23 + $0x68] sm:$0xff] }
 0x13c   : > { %1915 = vtanh.f32 %v1181_v51  ;;  %v1898_v51 = vpop.eup %1897 }
 0x13d   : > { %1917 = vtanh.f32 %v1185_v57 }
 0x13e   : > { %1919 = vtanh.f32 %v1189_v48 }
 0x140   : > { %v2487_v43 = vpop.permute.xlu1 %734  ;;  %v2489_v7 = vpop.permute.xlu0 %729 }
 0x141   : > { %v747_v42 = vmul.f32 %v2286_v17, %v2489_v7  ;;  %v748_v61 = vmul.f32 %v2298_v23, %v2487_v43  ;;  %v751_v62 = vmul.f32 %v2282_v15, %v2489_v7  ;;  %v752_v4 = vmul.f32 %v2294_v21, %v2487_v43  ;;  %v1900_v23 = vpop.eup %1899 }
 0x142   : > { %v755_v57 = vmul.f32 %v2329_v58, %v2489_v7  ;;  %v756_v48 = vmul.f32 %v2325_v33, %v2487_v43  ;;  %v759_v45 = vmul.f32 %v2364_v13, %v2489_v7  ;;  %v760_v17 = vmul.f32 %v2360_v10, %v2487_v43  ;;  %v1902_v33 = vpop.eup %1901 }
 0x143   : > { %v763_v15 = vmul.f32 %v2386_v28, %v2489_v7  ;;  %v764_v21 = vmul.f32 %v2402_v35, %v2487_v43  ;;  %v767_v22 = vmul.f32 %v2422_v18, %v2489_v7  ;;  %v768_v58 = vmul.f32 %v2434_v19, %v2487_v43  ;;  %v1904_v35 = vpop.eup %1903 }
 0x144   : > { %v2519_v47 = vpop.permute.xlu1 %739  ;;  %v2521_v13 = vpop.permute.xlu0 %744  ;;  %v771_v10 = vmul.f32 %v1872_v8, %v2489_v7  ;;  %v772_v0 = vmul.f32 %v1870_v53, %v2487_v43  ;;  %v775_v28 = vmul.f32 %v1888_v54, %v2489_v7  ;;  %v776_v39 = vmul.f32 %v1886_v52, %v2487_v43 }
 0x145   : > { %v749_v18 = vmul.f32 %v2352_v6, %v2519_v47  ;;  %v750_v19 = vmul.f32 %v2418_v41, %v2521_v13  ;;  %v753_v59 = vmul.f32 %v2348_v3, %v2519_v47  ;;  %v754_v9 = vmul.f32 %v2414_v40, %v2521_v13  ;;  %v1906_v8 = vpop.eup %1905 }
 0x146   : > { %v757_v53 = vmul.f32 %v2390_v31, %v2519_v47  ;;  %v758_v52 = vmul.f32 %v2457_v11, %v2521_v13  ;;  %v761_v54 = vmul.f32 %v2426_v44, %v2519_v47  ;;  %v762_v6 = vmul.f32 %v1884_v46, %v2521_v13  ;;  %v1908_v30 = vpop.eup %1907 }
 0x147   : > { %v765_v41 = vmul.f32 %v2453_v5, %v2519_v47  ;;  %v766_v3 = vmul.f32 %v1900_v23, %v2521_v13  ;;  %v769_v40 = vmul.f32 %v1882_v60, %v2519_v47  ;;  %v770_v38 = vmul.f32 %v1906_v8, %v2521_v13  ;;  %v2547_v55 = vpop.eup %1909 }
 0x148   : > { %2785 = vst [vmem:[#allocation23_spill] sm:$0xff] %v2547_v55  ;;  %v773_v31 = vmul.f32 %v1898_v51, %v2519_v47  ;;  %v774_v11 = vmul.f32 %v1908_v30, %v2521_v13  ;;  %v777_v44 = vmul.f32 %v1902_v33, %v2519_v47  ;;  %v778_v46 = vmul.f32 %v1904_v35, %v2521_v13  ;;  %v2553_v36 = vpop.eup %1911 }
 0x149   : > { %2786 = vst [vmem:[#allocation24_spill] sm:$0xff] %v2553_v36  ;;  %v779_v37 = vadd.f32 %v748_v61, %v747_v42  ;;  %v788_v5 = vadd.f32 %v752_v4, %v751_v62  ;;  %v797_v20 = vadd.f32 %v756_v48, %v755_v57  ;;  %v806_v23 = vadd.f32 %v760_v17, %v759_v45  ;;  %v2555_v56 = vpop.eup %1913 }
 0x14a   : > { %v815_v60 = vadd.f32 %v764_v21, %v763_v15  ;;  %v824_v8 = vadd.f32 %v768_v58, %v767_v22  ;;  %v833_v24 = vadd.f32 %v772_v0, %v771_v10  ;;  %v842_v55 = vadd.f32 %v776_v39, %v775_v28  ;;  %v2557_v26 = vpop.eup %1915 }
 0x14b   : > { %v780_v51 = vadd.f32 %v779_v37, %v749_v18  ;;  %v789_v30 = vadd.f32 %v788_v5, %v753_v59  ;;  %v798_v49 = vadd.f32 %v797_v20, %v757_v53  ;;  %v807_v33 = vadd.f32 %v806_v23, %v761_v54  ;;  %v2559_v34 = vpop.eup %1917 }
 0x14c   : > { %v816_v35 = vadd.f32 %v815_v60, %v765_v41  ;;  %v825_v36 = vadd.f32 %v824_v8, %v769_v40  ;;  %v834_v42 = vadd.f32 %v833_v24, %v773_v31  ;;  %v843_v61 = vadd.f32 %v842_v55, %v777_v44  ;;  %v2561_v62 = vpop.eup %1919 }
 0x14d   : > { %v781_v4 = vadd.f32 %v780_v51, %v750_v19  ;;  %v790_v57 = vadd.f32 %v789_v30, %v754_v9  ;;  %v799_v48 = vadd.f32 %v798_v49, %v758_v52  ;;  %v808_v45 = vadd.f32 %v807_v33, %v762_v6 }
 0x14e   : > { %v817_v0 = vadd.f32 %v816_v35, %v766_v3  ;;  %v826_v39 = vadd.f32 %v825_v36, %v770_v38  ;;  %v835_v17 = vadd.f32 %v834_v42, %v774_v11  ;;  %v844_v15 = vadd.f32 %v843_v61, %v778_v46 }
 0x14f   : > { %v782_v37 = vrot.slane %v781_v4, 4  ;;  %v791_v59 = vrot.slane %v790_v57, 4  ;;  %v800_v20 = vrot.slane %v799_v48, 4  ;;  %v809_v21 = vrot.slane %v808_v45, 4 }
 0x150   : > { %v818_v22 = vrot.slane %v817_v0, 4  ;;  %v827_v58 = vrot.slane %v826_v39, 4  ;;  %v836_v10 = vrot.slane %v835_v17, 4  ;;  %v845_v28 = vrot.slane %v844_v15, 4 }
 0x151   : > { %v783_v24 = vadd.f32 %v782_v37, %v781_v4  ;;  %v792_v55 = vadd.f32 %v791_v59, %v790_v57  ;;  %v801_v18 = vadd.f32 %v800_v20, %v799_v48  ;;  %v810_v19 = vadd.f32 %v809_v21, %v808_v45 }
 0x152   : > { %v819_v49 = vadd.f32 %v818_v22, %v817_v0  ;;  %v828_v9 = vadd.f32 %v827_v58, %v826_v39  ;;  %v837_v53 = vadd.f32 %v836_v10, %v835_v17  ;;  %v846_v36 = vadd.f32 %v845_v28, %v844_v15 }
 0x153   : > { %v784_v38 = vrot.slane %v783_v24, 2  ;;  %v793_v52 = vrot.slane %v792_v55, 2  ;;  %v802_v54 = vrot.slane %v801_v18, 2  ;;  %v811_v6 = vrot.slane %v810_v19, 2 }
 0x154   : > { %v820_v41 = vrot.slane %v819_v49, 2  ;;  %v829_v3 = vrot.slane %v828_v9, 2  ;;  %v838_v40 = vrot.slane %v837_v53, 2  ;;  %v847_v31 = vrot.slane %v846_v36, 2 }
 0x155   : > { %v785_v11 = vadd.f32 %v784_v38, %v783_v24  ;;  %v794_v44 = vadd.f32 %v793_v52, %v792_v55  ;;  %v803_v46 = vadd.f32 %v802_v54, %v801_v18  ;;  %v812_v5 = vadd.f32 %v811_v6, %v810_v19 }
 0x156   : > { %v821_v23 = vadd.f32 %v820_v41, %v819_v49  ;;  %v830_v60 = vadd.f32 %v829_v3, %v828_v9  ;;  %v839_v8 = vadd.f32 %v838_v40, %v837_v53  ;;  %v848_v51 = vadd.f32 %v847_v31, %v846_v36  ;;  %v2793_v3 = vld [vmem:[#allocation11_spill] sm:$0xff]  ;;  %v2794_v31 = vld [vmem:[#allocation10_spill] sm:$0xff] }
 0x157   : > { %v786_v30 = vrot.slane %v785_v11, 1  ;;  %v795_v33 = vrot.slane %v794_v44, 1  ;;  %v804_v35 = vrot.slane %v803_v46, 1  ;;  %v813_v42 = vrot.slane %v812_v5, 1 }
 0x158   : > { %v822_v61 = vrot.slane %v821_v23, 1  ;;  %v831_v4 = vrot.slane %v830_v60, 1  ;;  %v840_v57 = vrot.slane %v839_v8, 1  ;;  %v849_v48 = vrot.slane %v848_v51, 1 }
 0x159   : > { %v787_v45 = vadd.f32 %v786_v30, %v785_v11  ;;  %v796_v0 = vadd.f32 %v795_v33, %v794_v44  ;;  %v805_v39 = vadd.f32 %v804_v35, %v803_v46  ;;  %v814_v17 = vadd.f32 %v813_v42, %v812_v5  ;;  %v2795_v46 = vld [vmem:[#allocation15_spill] sm:$0xff]  ;;  %v2798_v33 = vld [vmem:[#allocation13_spill] sm:$0xff] }
 0x15a   : > { %v823_v15 = vadd.f32 %v822_v61, %v821_v23  ;;  %v832_v37 = vadd.f32 %v831_v4, %v830_v60  ;;  %v841_v59 = vadd.f32 %v840_v57, %v839_v8  ;;  %v850_v20 = vadd.f32 %v849_v48, %v848_v51  ;;  %v2796_v23 = vld [vmem:[#allocation24_spill] sm:$0xff]  ;;  %v2797_v8 = vld [vmem:[#allocation14_spill] sm:$0xff]  ;;  %v2799_v42 = vld [vmem:[#allocation19_spill] sm:$0xff] }
 0x15b   : > { %v865_v21 = vsel %vm864_vm2, %v796_v0, %v787_v45  ;;  %v1222_v22 = vmul.f32 %v2306_v27, %v2489_v7  ;;  %v1223_v58 = vmul.f32 %v2302_v25, %v2487_v43  ;;  %v1224_v10 = vmul.f32 %v2372_v16, %v2519_v47  ;;  %v2800_v57 = vld [vmem:[#allocation18_spill] sm:$0xff]  ;;  %v2801_v45 = vld [vmem:[#allocation17_spill] sm:$0xff] }
 0x15c   : > { %v867_v28 = vsel %vm866_vm3, %v805_v39, %v865_v21  ;;  %v1225_v24 = vmul.f32 %v2430_v12, %v2521_v13  ;;  %v1226_v55 = vmul.f32 %v2321_v32, %v2489_v7  ;;  %v1227_v18 = vmul.f32 %v2314_v50, %v2487_v43  ;;  %v2787_v32 = vld [vmem:[#allocation9_spill] sm:$0xff]  ;;  %v2788_v50 = vld [vmem:[#allocation16_spill] sm:$0xff]  ;;  %v2802_v39 = vld [vmem:[#allocation23_spill] sm:$0xff] }
 0x15d   : > { %v869_v19 = vsel %vm868_vm4, %v814_v17, %v867_v28  ;;  %v1228_v27 = vmul.f32 %v2368_v14, %v2519_v47  ;;  %v1229_v25 = vmul.f32 %v2442_v29, %v2521_v13  ;;  %v1230_v16 = vmul.f32 %v2344_v1, %v2489_v7  ;;  %v2789_v14 = vld [vmem:[#allocation8_spill] sm:$0xff]  ;;  %v2790_v29 = vld [vmem:[#allocation7_spill] sm:$0xff] }
 0x15e   : > { %v871_v49 = vsel %vm870_vm5, %v823_v15, %v869_v19  ;;  %v1231_v12 = vmul.f32 %v2337_v63, %v2487_v43  ;;  %v1232_v9 = vmul.f32 %v2787_v32, %v2519_v47  ;;  %v1233_v53 = vmul.f32 %v2788_v50, %v2521_v13  ;;  %v2791_v1 = vld [vmem:[#allocation12_spill] sm:$0xff] }
 0x15f   : > { %v873_v36 = vsel %vm872_vm6, %v832_v37, %v871_v49  ;;  %v1234_v38 = vmul.f32 %v2789_v14, %v2489_v7  ;;  %v1235_v52 = vmul.f32 %v2790_v29, %v2487_v43  ;;  %v1236_v54 = vmul.f32 %v2791_v1, %v2519_v47  ;;  %v2792_v63 = vld [vmem:[#allocation20_spill] sm:$0xff]  ;;  %v2803_v37 = vld [vmem:[#allocation22_spill] sm:$0xff] }
 0x160   : > { %v875_v6 = vsel %vm874_vm7, %v841_v59, %v873_v36  ;;  %v1237_v41 = vmul.f32 %v2792_v63, %v2521_v13  ;;  %v1238_v40 = vmul.f32 %v2793_v3, %v2489_v7  ;;  %v1239_v11 = vmul.f32 %v2794_v31, %v2487_v43 }
 0x161   : > { %v877_v44 = vsel %vm876_vm8, %v850_v20, %v875_v6  ;;  %v1240_v5 = vmul.f32 %v2795_v46, %v2519_v47  ;;  %v1241_v60 = vmul.f32 %v2796_v23, %v2521_v13  ;;  %v1242_v51 = vmul.f32 %v2797_v8, %v2489_v7  ;;  %v2804_v20 = vld [vmem:[#allocation21_spill] sm:$0xff] }
 0x162   : > { %v2615_v30 = vsel %vm855_vm9, %v877_v44, -1e+30  ;;  %v1243_v35 = vmul.f32 %v2798_v33, %v2487_v43  ;;  %v1244_v61 = vmul.f32 %v2799_v42, %v2519_v47  ;;  %v1245_v4 = vmul.f32 %v2557_v26, %v2521_v13 }
 0x163   : > { %881 = vmax.xlane.f32.xlu1 %v2615_v30  ;;  %v1246_v48 = vmul.f32 %v2800_v57, %v2489_v7  ;;  %v1247_v0 = vmul.f32 %v2801_v45, %v2487_v43  ;;  %v1248_v17 = vmul.f32 %v2802_v39, %v2519_v47  ;;  %v1249_v15 = vmul.f32 %v2559_v34, %v2521_v13 }
 0x164   : > { %v1250_v59 = vmul.f32 %v2803_v37, %v2489_v7  ;;  %v1251_v26 = vmul.f32 %v2804_v20, %v2487_v43  ;;  %v1252_v21 = vmul.f32 %v2555_v56, %v2519_v47  ;;  %v1253_v28 = vmul.f32 %v2561_v62, %v2521_v13 }
 0x165   : > { %v1254_v19 = vadd.f32 %v1223_v58, %v1222_v22  ;;  %v1263_v49 = vadd.f32 %v1227_v18, %v1226_v55  ;;  %v1272_v32 = vadd.f32 %v1231_v12, %v1230_v16  ;;  %v1281_v50 = vadd.f32 %v1235_v52, %v1234_v38 }
 0x166   : > { %v1290_v36 = vadd.f32 %v1239_v11, %v1238_v40  ;;  %v1299_v14 = vadd.f32 %v1243_v35, %v1242_v51  ;;  %v1308_v29 = vadd.f32 %v1247_v0, %v1246_v48  ;;  %v1317_v34 = vadd.f32 %v1251_v26, %v1250_v59 }
 0x167   : > { %v1255_v1 = vadd.f32 %v1254_v19, %v1224_v10  ;;  %v1264_v6 = vadd.f32 %v1263_v49, %v1228_v27  ;;  %v1273_v7 = vadd.f32 %v1272_v32, %v1232_v9  ;;  %v1282_v63 = vadd.f32 %v1281_v50, %v1236_v54 }
 0x168   : > { %v1291_v3 = vadd.f32 %v1290_v36, %v1240_v5  ;;  %v1300_v43 = vadd.f32 %v1299_v14, %v1244_v61  ;;  %v1309_v31 = vadd.f32 %v1308_v29, %v1248_v17  ;;  %v1318_v44 = vadd.f32 %v1317_v34, %v1252_v21 }
 0x169   : > { %v1256_v56 = vadd.f32 %v1255_v1, %v1225_v24  ;;  %v1265_v47 = vadd.f32 %v1264_v6, %v1229_v25  ;;  %v1274_v46 = vadd.f32 %v1273_v7, %v1233_v53  ;;  %v1283_v13 = vadd.f32 %v1282_v63, %v1237_v41 }
 0x16a   : > { %v1292_v62 = vadd.f32 %v1291_v3, %v1241_v60  ;;  %v1301_v22 = vadd.f32 %v1300_v43, %v1245_v4  ;;  %v1310_v58 = vadd.f32 %v1309_v31, %v1249_v15  ;;  %v1319_v55 = vadd.f32 %v1318_v44, %v1253_v28 }
 0x16b   : > { %v1257_v18 = vrot.slane %v1256_v56, 4  ;;  %v1266_v16 = vrot.slane %v1265_v47, 4  ;;  %v1275_v12 = vrot.slane %v1274_v46, 4  ;;  %v1284_v38 = vrot.slane %v1283_v13, 4 }
 0x16c   : > { %v1293_v10 = vrot.slane %v1292_v62, 4  ;;  %v1302_v27 = vrot.slane %v1301_v22, 4  ;;  %v1311_v9 = vrot.slane %v1310_v58, 4  ;;  %v1320_v52 = vrot.slane %v1319_v55, 4 }
 0x16d   : > { %v1258_v54 = vadd.f32 %v1257_v18, %v1256_v56  ;;  %v1267_v40 = vadd.f32 %v1266_v16, %v1265_v47  ;;  %v1276_v11 = vadd.f32 %v1275_v12, %v1274_v46  ;;  %v1285_v5 = vadd.f32 %v1284_v38, %v1283_v13  ;;  %v924_v46 = vld [vmem:[%s2134_s23 + $0x78] sm:$0xff]  ;;  %v921_v18 = vld [vmem:[%s2134_s23 + $0x60] sm:$0xff] }
 0x16e   : > { %v1294_v24 = vadd.f32 %v1293_v10, %v1292_v62  ;;  %v1303_v25 = vadd.f32 %v1302_v27, %v1301_v22  ;;  %v1312_v53 = vadd.f32 %v1311_v9, %v1310_v58  ;;  %v1321_v41 = vadd.f32 %v1320_v52, %v1319_v55  ;;  %v1634_v13 = vld [vmem:[%s2134_s23 + $0xf8] sm:$0xff]  ;;  %v923_v22 = vld [vmem:[%s2134_s23 + $0x70] sm:$0xff]  ;;  %v1632_v55 = vld [vmem:[%s2134_s23 + $0xe8] sm:$0xff] }
 0x16f   : > { %v1259_v23 = vrot.slane %v1258_v54, 2  ;;  %v1268_v60 = vrot.slane %v1267_v40, 2  ;;  %v1277_v8 = vrot.slane %v1276_v11, 2  ;;  %v1286_v51 = vrot.slane %v1285_v5, 2  ;;  %v1633_v58 = vld [vmem:[%s2134_s23 + $0xf0] sm:$0xff]  ;;  %v1631_v16 = vld [vmem:[%s2134_s23 + $0xe0] sm:$0xff] }
 0x170   : > { %v1295_v33 = vrot.slane %v1294_v24, 2  ;;  %v1304_v35 = vrot.slane %v1303_v25, 2  ;;  %v1313_v42 = vrot.slane %v1312_v53, 2  ;;  %v1322_v61 = vrot.slane %v1321_v41, 2  ;;  %v920_v12 = vld [vmem:[%s2134_s23 + $0x58] sm:$0xff]  ;;  %v919_v10 = vld [vmem:[%s2134_s23 + $0x50] sm:$0xff] }
 0x171   : > { %v1260_v4 = vadd.f32 %v1259_v23, %v1258_v54  ;;  %v1269_v57 = vadd.f32 %v1268_v60, %v1267_v40  ;;  %v1278_v48 = vadd.f32 %v1277_v8, %v1276_v11  ;;  %v1287_v45 = vadd.f32 %v1286_v51, %v1285_v5  ;;  %v1630_v38 = vld [vmem:[%s2134_s23 + $0xd8] sm:$0xff]  ;;  %v1629_v27 = vld [vmem:[%s2134_s23 + $0xd0] sm:$0xff]  ;;  %v918_v9 = vld [vmem:[%s2134_s23 + $0x48] sm:$0xff] }
 0x172   : > { %v1296_v0 = vadd.f32 %v1295_v33, %v1294_v24  ;;  %v1305_v39 = vadd.f32 %v1304_v35, %v1303_v25  ;;  %v1314_v17 = vadd.f32 %v1313_v42, %v1312_v53  ;;  %v1323_v15 = vadd.f32 %v1322_v61, %v1321_v41  ;;  %v1628_v52 = vld [vmem:[%s2134_s23 + $0xc8] sm:$0xff]  ;;  %v880_v54 = vld [vmem:[#allocation2] sm:$0xff]  ;;  %v2686_v53 = vld [vmem:[#allocation2 + $0x8] sm:$0xff] }
 0x173   : > { %v1261_v37 = vrot.slane %v1260_v4, 1  ;;  %v1270_v59 = vrot.slane %v1269_v57, 1  ;;  %v1279_v20 = vrot.slane %v1278_v48, 1  ;;  %v1288_v26 = vrot.slane %v1287_v45, 1  ;;  %v917_v60 = vld [vmem:[%s2134_s23 + $0x40] sm:$0xff]  ;;  %v916_v33 = vld [vmem:[%s2134_s23 + $0x38] sm:$0xff] }
 0x174   : > { %v1297_v21 = vrot.slane %v1296_v0, 1  ;;  %v1306_v32 = vrot.slane %v1305_v39, 1  ;;  %v1315_v50 = vrot.slane %v1314_v17, 1  ;;  %v1324_v14 = vrot.slane %v1323_v15, 1  ;;  %v1627_v8 = vld [vmem:[%s2134_s23 + $0xc0] sm:$0xff]  ;;  %v1626_v35 = vld [vmem:[%s2134_s23 + $0xb8] sm:$0xff] }
 0x175   : > { %v1262_v28 = vadd.f32 %v1261_v37, %v1260_v4  ;;  %v1271_v19 = vadd.f32 %v1270_v59, %v1269_v57  ;;  %v1280_v49 = vadd.f32 %v1279_v20, %v1278_v48  ;;  %v1289_v36 = vadd.f32 %v1288_v26, %v1287_v45  ;;  %v915_v42 = vld [vmem:[%s2134_s23 + $0x30] sm:$0xff]  ;;  %v914_v4 = vld [vmem:[%s2134_s23 + $0x28] sm:$0xff]  ;;  %v913_v48 = vld [vmem:[%s2134_s23 + $0x20] sm:$0xff] }
 0x176   : > { %v1298_v34 = vadd.f32 %v1297_v21, %v1296_v0  ;;  %v1307_v6 = vadd.f32 %v1306_v32, %v1305_v39  ;;  %v1316_v63 = vadd.f32 %v1315_v50, %v1314_v17  ;;  %v1325_v43 = vadd.f32 %v1324_v14, %v1323_v15  ;;  %v1625_v61 = vld [vmem:[%s2134_s23 + $0xb0] sm:$0xff]  ;;  %v1624_v57 = vld [vmem:[%s2134_s23 + $0xa8] sm:$0xff]  ;;  %v1623_v45 = vld [vmem:[%s2134_s23 + $0xa0] sm:$0xff] }
 0x177   : > { %v1334_v29 = vsel %vm864_vm2, %v1271_v19, %v1262_v28  ;;  %v1977_v62 = vmov 0.0   ;;  %v912_v0 = vld [vmem:[%s2134_s23 + $0x18] sm:$0xff]  ;;  %v911_v17 = vld [vmem:[%s2134_s23 + $0x10] sm:$0xff]  ;;  %v910_v37 = vld [vmem:[%s2134_s23 + $0x8] sm:$0xff] }
 0x178   : > { %v1335_v1 = vsel %vm866_vm3, %v1280_v49, %v1334_v29  ;;  %1675 = vmatprep.subr.mxu0 %v1977_v62  ;;  %1710 = vmatprep.subr.mxu1 %v1977_v62  ;;  %v1622_v39 = vld [vmem:[%s2134_s23 + $0x98] sm:$0xff]  ;;  %v1621_v15 = vld [vmem:[%s2134_s23 + $0x90] sm:$0xff]  ;;  %v1620_v59 = vld [vmem:[%s2134_s23 + $0x88] sm:$0xff] }
 0x179   : > { %v1336_v7 = vsel %vm868_vm4, %v1289_v36, %v1335_v1  ;;  %1676 = vmatpush3.msra.mxu0 %v924_v46  ;;  %1711 = vmatpush3.msra.mxu1 %v1634_v13  ;;  %v909_v20 = vld [vmem:[%s2134_s23] sm:$0xff] }
 0x17a   : > { %v1337_v3 = vsel %vm870_vm5, %v1298_v34, %v1336_v7  ;;  %1677 = vmatprep.subr.mxu0 %v1977_v62  ;;  %1712 = vmatprep.subr.mxu1 %v1977_v62  ;;  %v1619_v26 = vld [vmem:[%s2134_s23 + $0x80] sm:$0xff] }
 0x17b   : > { %v1338_v31 = vsel %vm872_vm6, %v1307_v6, %v1337_v3  ;;  %1678 = vmatpush3.msra.mxu0 %v923_v22  ;;  %1713 = vmatpush3.msra.mxu1 %v1633_v58  ;;  %v895_v1 = vld [vmem:[#allocation3] sm:$0xff]  ;;  %v1360_v3 = vld [vmem:[#allocation3 + $0x8] sm:$0xff]  ;;  %v1367_v22 = vld [vmem:[#allocation4 + $0x8] sm:$0xff] }
 0x17c   : > { %v1339_v44 = vsel %vm874_vm7, %v1316_v63, %v1338_v31  ;;  %1679 = vmatprep.subr.mxu0 %v1977_v62  ;;  %1714 = vmatprep.subr.mxu1 %v1977_v62 }
 0x17d   : > { %v1340_v56 = vsel %vm876_vm8, %v1325_v43, %v1339_v44  ;;  %1680 = vmatpush3.msra.mxu0 %v922_v2  ;;  %1715 = vmatpush3.msra.mxu1 %v1632_v55 }
 0x17e   : > { %v2649_v47 = vsel %vm855_vm9, %v1340_v56, -1e+30  ;;  %1681 = vmatprep.subr.mxu0 %v1977_v62  ;;  %1716 = vmatprep.subr.mxu1 %v1977_v62  ;;  %v902_v56 = vld [vmem:[#allocation4] sm:$0xff] }
 0x17f   : > { %1345 = vmax.xlane.f32.xlu0 %v2649_v47  ;;  %1682 = vmatpush3.msra.mxu0 %v921_v18 }
 0x180   : > { %1717 = vmatpush3.msra.mxu1 %v1631_v16  ;;  %1683 = vmatprep.subr.mxu0 %v1977_v62 }
 0x181   : > { %1718 = vmatprep.subr.mxu1 %v1977_v62  ;;  %1684 = vmatpush3.msra.mxu0 %v920_v12 }
 0x182   : > { %1719 = vmatpush3.msra.mxu1 %v1630_v38  ;;  %1685 = vmatprep.subr.mxu0 %v1977_v62 }
 0x183   : > { %1720 = vmatprep.subr.mxu1 %v1977_v62  ;;  %1686 = vmatpush3.msra.mxu0 %v919_v10 }
 0x184   : > { %1721 = vmatpush3.msra.mxu1 %v1629_v27  ;;  %1687 = vmatprep.subr.mxu0 %v1977_v62 }
 0x185   : > { %1722 = vmatprep.subr.mxu1 %v1977_v62  ;;  %1688 = vmatpush3.msra.mxu0 %v918_v9 }
 0x186   : > { %1723 = vmatpush3.msra.mxu1 %v1628_v52  ;;  %1689 = vmatprep.subr.mxu0 %v1977_v62 }
 0x187   : > { %1724 = vmatprep.subr.mxu1 %v1977_v62  ;;  %1690 = vmatpush3.msra.mxu0 %v917_v60 }
 0x188   : > { %1725 = vmatpush3.msra.mxu1 %v1627_v8  ;;  %1691 = vmatprep.subr.mxu0 %v1977_v62 }
 0x189   : > { %1726 = vmatprep.subr.mxu1 %v1977_v62  ;;  %1692 = vmatpush3.msra.mxu0 %v916_v33 }
 0x18a   : > { %1727 = vmatpush3.msra.mxu1 %v1626_v35  ;;  %1693 = vmatprep.subr.mxu0 %v1977_v62 }
 0x18b   : > { %1728 = vmatprep.subr.mxu1 %v1977_v62  ;;  %1694 = vmatpush3.msra.mxu0 %v915_v42 }
 0x18c   : > { %1729 = vmatpush3.msra.mxu1 %v1625_v61  ;;  %1695 = vmatprep.subr.mxu0 %v1977_v62 }
 0x18d   : > { %1730 = vmatprep.subr.mxu1 %v1977_v62  ;;  %1696 = vmatpush3.msra.mxu0 %v914_v4 }
 0x18e   : > { %1731 = vmatpush3.msra.mxu1 %v1624_v57  ;;  %1697 = vmatprep.subr.mxu0 %v1977_v62 }
 0x18f   : > { %1732 = vmatprep.subr.mxu1 %v1977_v62  ;;  %1698 = vmatpush3.msra.mxu0 %v913_v48 }
 0x190   : > { %1733 = vmatpush3.msra.mxu1 %v1623_v45  ;;  %1699 = vmatprep.subr.mxu0 %v1977_v62 }
 0x191   : > { %1734 = vmatprep.subr.mxu1 %v1977_v62  ;;  %1700 = vmatpush3.msra.mxu0 %v912_v0 }
 0x192   : > { %1735 = vmatpush3.msra.mxu1 %v1622_v39  ;;  %1701 = vmatprep.subr.mxu0 %v1977_v62 }
 0x193   : > { %1736 = vmatprep.subr.mxu1 %v1977_v62  ;;  %1702 = vmatpush3.msra.mxu0 %v911_v17 }
 0x194   : > { %1737 = vmatpush3.msra.mxu1 %v1621_v15  ;;  %1703 = vmatprep.subr.mxu0 %v1977_v62 }
 0x195   : > { %1738 = vmatprep.subr.mxu1 %v1977_v62  ;;  %1704 = vmatpush3.msra.mxu0 %v910_v37 }
 0x196   : > { %1739 = vmatpush3.msra.mxu1 %v1620_v59  ;;  %1705 = vmatprep.subr.mxu0 %v1977_v62 }
 0x197   : > { %1740 = vmatprep.subr.mxu1 %v1977_v62  ;;  %1706 = vmatpush3.msra.mxu0 %v909_v20 }
 0x198   : > { %1707 = vmatprep.mubr.msk.f32.mxu0 %vm1978_vm11, %v1977_v62  ;;  %1741 = vmatpush3.msra.mxu1 %v1619_v26 }
 0x199   : > { %1742 = vmatprep.mubr.msk.f32.mxu1 %vm1978_vm11, %v1977_v62 }
 0x1ec   : > { %v882_v40 = vpop.xlane.xlu1 %881 }
 0x1ed   : > { %v883_v11 = vmax.f32 %v880_v54, %v882_v40 }
 0x1ef   : > { %v884_v5 = vsub.f32 %v880_v54, %v883_v11  ;;  %998 = vst.msk [vmem:[#allocation2] sm:$0xff] %vm900_vm10, %v883_v11  ;;  %889 = vperm.xlu0 %1791, %v883_v11  }
 0x1f1   : > { %v885_v24 = vmul.f32 1.442695, %v884_v5 }
 0x1f3   : > { %1921 = vpow2.f32 %v885_v24 }
 0x200   : > { %v2683_v25 = vpop.eup %1921 }
 0x201   : > { %905 = vperm.xlu0 %1791, %v2683_v25  }
 0x208   : > { %v1346_v41 = vpop.xlane.xlu0 %1345 }
 0x209   : > { %v2689_v23 = vmax.f32 %v2686_v53, %v1346_v41 }
 0x20b   : > { %v1348_v51 = vsub.f32 %v2686_v53, %v2689_v23  ;;  %1463 = vst.msk [vmem:[#allocation2 + $0x8] sm:$0xff] %vm900_vm10, %v2689_v23  ;;  %1353 = vperm.xlu1 %1792, %v2689_v23  }
 0x20d   : > { %v1349_v32 = vmul.f32 1.442695, %v1348_v51 }
 0x26a   : > { %v890_v21 = vpop.permute.xlu0 %889 }
 0x26b   : > { %v892_v28 = vsub.f32 %v2615_v30, %v890_v21  ;;  %v896_v30 = vmul.f32 %v2683_v25, %v895_v1 }
 0x26d   : > { %v893_v19 = vmul.f32 1.442695, %v892_v28 }
 0x26f   : > { %1923 = vpow2.f32 %v893_v19 }
 0x270   : > { %1925 = vpow2.f32 %v1349_v32 }
 0x27c   : > { %v1924_v49 = vpop.eup %1923  ;;  %v906_v63 = vpop.permute.xlu0 %905 }
 0x27d   : > { %897 = vadd.xlane.f32.xlu1 %v1924_v49  ;;  %1708 = vmatmul.mubr.f32.vlgmr.msra.gmra.mxu0 %v1924_v49  ;;  %v1926_v29 = vpop.eup %1925 }
 0x27e   : > { %v1361_v43 = vmul.f32 %v1926_v29, %v1360_v3 }
 0x286   : > { %v1354_v50 = vpop.permute.xlu1 %1353 }
 0x287   : > { %v1356_v36 = vsub.f32 %v2649_v47, %v1354_v50  ;;  %v908_v47 = vmul.f32 %v906_v63, %v902_v56 }
 0x289   : > { %v1357_v14 = vmul.f32 1.442695, %v1356_v36 }
 0x28b   : > { %1927 = vpow2.f32 %v1357_v14 }
 0x28e   : > { %1370 = vperm.xlu1 %1792, %v1926_v29  }
 0x298   : > { %v1928_v34 = vpop.eup %1927 }
 0x299   : > { %1362 = vadd.xlane.f32.xlu0 %v1928_v34  ;;  %1743 = vmatmul.mubr.f32.vlgmr.msra.gmra.mxu1 %v1928_v34 }
 0x306   : > { %v898_v6 = vpop.xlane.xlu1 %897 }
 0x307   : > { %v899_v7 = vadd.f32 %v898_v6, %v896_v30 }
 0x309   : > { %901 = vst.msk [vmem:[#allocation3] sm:$0xff] %vm900_vm10, %v899_v7 }
 0x30a   : > { %v1371_v58 = vpop.permute.xlu1 %1370 }
 0x30b   : > { %v1373_v2 = vmul.f32 %v1371_v58, %v1367_v22 }
 0x322   : > { %v1363_v31 = vpop.xlane.xlu0 %1362 }
 0x323   : > { %v1364_v44 = vadd.f32 %v1363_v31, %v1361_v43 }
 0x325   : > { %1365 = vst.msk [vmem:[#allocation3 + $0x8] sm:$0xff] %vm900_vm10, %v1364_v44 }
 0x33d   : > { %v991_v46 = vpop.f32.mrf.mxu0 }
 0x33e   : > { %v995_v13 = vadd.f32 %v991_v46, %v908_v47 }
 0x33f   : > { %v1709_v62 = vpop.f32.mrf.mxu0 }
 0x340   : > { %997 = vst.msk [vmem:[#allocation4] sm:$0xff] %vm996_vm12, %v995_v13 }
 0x358   : > { %1467 = sbr.rel (%p1635_p10) target bundleno = 1013 (0x3f5), region = 120 }
 0x359   : > { %v1457_v55 = vpop.f32.mrf.mxu1 }
 0x35a   : > { %v1461_v18 = vadd.f32 %v1457_v55, %v1373_v2 }
 0x35b   : > { %v1744_v16 = vpop.f32.mrf.mxu1 }
 0x35c   : > { %1462 = vst.msk [vmem:[#allocation4 + $0x8] sm:$0xff] %vm996_vm12, %v1461_v18 }
 0x35d   : > { %v1468_v12 = vld [vmem:[#allocation3] sm:$0xff]  ;;  %v1469_v38 = vld [vmem:[#allocation3 + $0x8] sm:$0xff]  ;;  %v1979_v10 = vmov 0   ;;  %v1478_v25 = vld [vmem:[#allocation4] sm:$0xff] }
 0x35e   : > { %1929 = vset.pattern.permute.xlu0 %v1979_v10  ;;  %1930 = vrcp.f32 %v1468_v12 }
 0x35f   : > { %1932 = vrcp.f32 %v1469_v38 }
 0x363   : > { %v1479_v23 = vld [vmem:[#allocation4 + $0x8] sm:$0xff] }
 0x36b   : > { %v1931_v27 = vpop.eup %1930 }
 0x36c   : > { %v1933_v9 = vpop.eup %1932  ;;  %v1472_v52 = vmul.f32 %v1931_v27, %v1468_v12 }
 0x36d   : > { %v1473_v54 = vmul.f32 %v1933_v9, %v1469_v38 }
 0x36e   : > { %v1474_v40 = vsub.f32 2.0, %v1472_v52 }
 0x36f   : > { %v1475_v11 = vsub.f32 2.0, %v1473_v54 }
 0x370   : > { %v1476_v5 = vmul.f32 %v1931_v27, %v1474_v40 }
 0x371   : > { %v1477_v24 = vmul.f32 %v1933_v9, %v1475_v11 }
 0x372   : > { %1482 = vperm.xlu0 %1929, %v1476_v5  }
 0x376   : > { %1487 = vperm.xlu0 %1929, %v1477_v24  }
 0x3ed   : > { %v1483_v53 = vpop.permute.xlu0 %1482 }
 0x3ee   : > { %v1490_v41 = vmul.f32 %v1483_v53, %v1478_v25 }
 0x3f0   : > { %1492 = vst.msk [vmem:[%s2767_s4] sm:$0xff] %vm996_vm12, %v1490_v41 }
 0x3f1   : > { %v1488_v60 = vpop.permute.xlu0 %1487 }
 0x3f2   : > { %v1491_v8 = vmul.f32 %v1488_v60, %v1479_v23 }
 0x3f4   : > { %1493 = vst.msk [vmem:[%s2767_s4 + $0x8] sm:$0xff] %vm996_vm12, %v1491_v8 }
 0x3f5 PF: > { %s14_s19 = sadd.s32 1, %s1972_s19   ;;  %s2805_s15 = smov %s1960_s16 }
 0x3f6   : > { %p11_p11 = scmp.ge.s32.totalorder %s14_s19, 4   ;;  %s2806_s16 = smov %s2044_s24 }
 0x3f7   : > { %s2807_s17 = smov %s1968_s18  ;;  %s2808_s18 = smov %s2810_s20 }
 0x3f8   :  { %13 = sbr.rel (!%p11_p11) target bundleno = 3 (0x3), region = 172 }

</bundles_post_ra>
